<compile_context>
chip_gen: v7x
topology: tpu7x:2x2x1
jax: 0.10.0
libtpu: 0.0.40
codegen_flags: <defaults>
</compile_context>

<pallas_src>
import jax
import jax.numpy as jnp
from jax.experimental import pallas as pl
from jax.experimental.pallas import tpu as pltpu

# ---- model hyper-parameters (small, consistent with the encoder structure) ----
BATCH = 2
SEQ = 8
HIDDEN = 32          # stand-in for DebertaEncdoer.hidden_size == 1024
N_HEADS = 4
HEAD_DIM = HIDDEN // N_HEADS
FFN_DIM = 4 * HIDDEN
N_LAYERS = 2
VOCAB = 100
LN_EPS = 1e-7        # DeBERTa layer-norm eps
ROWS = BATCH * SEQ   # flattened (batch * seq) token rows

WEIGHT_ORDER = ("wqkv", "bqkv", "wo", "bo", "g1", "be1",
                "w1", "bf1", "w2", "bf2", "g2", "be2")
N_LAYER_TENSORS = len(WEIGHT_ORDER)


def _layer_norm(x, g, b, eps=LN_EPS):
    mu = jnp.mean(x, axis=-1, keepdims=True)
    var = jnp.mean((x - mu) ** 2, axis=-1, keepdims=True)
    return (x - mu) * jax.lax.rsqrt(var + eps) * g + b


# ----------------------------- fused Pallas kernel ---------------------------

def encoder_kernel(*refs):
    """Embedding LayerNorm + all N_LAYERS transformer layers in one grid step.

    refs = (emb, attn_bias, emb_ln_g, emb_ln_b,
            <12 tensors per layer> * N_LAYERS,      # inputs
            out,                                    # output
            ctx_scratch)                            # VMEM scratch
    """
    emb_ref, bias_ref, eg_ref, eb_ref = refs[:4]
    layer_refs = refs[4:4 + N_LAYERS * N_LAYER_TENSORS]
    o_ref = refs[4 + N_LAYERS * N_LAYER_TENSORS]
    ctx_ref = refs[5 + N_LAYERS * N_LAYER_TENSORS]          # (ROWS, HIDDEN) f32

    # embedding LayerNorm (f32)
    x = _layer_norm(emb_ref[...], eg_ref[...], eb_ref[...])          # (ROWS, H)
    # hoisted additive attention bias: 0 = attend, -1e9 = masked / cross-batch
    bias = bias_ref[...]                                             # (ROWS, ROWS)

    scale = 1.0 / (HEAD_DIM ** 0.5)
    for l in range(N_LAYERS):
        (wqkv, bqkv, wo, bo, g1, be1,
         w1, bf1, w2, bf2, g2, be2) = layer_refs[l * N_LAYER_TENSORS:
                                                 (l + 1) * N_LAYER_TENSORS]

        # fused QKV projection: bf16 operands, f32 accumulation on the MXU
        qkv = jnp.dot(x.astype(jnp.bfloat16), wqkv[...],
                      preferred_element_type=jnp.float32) + bqkv[...]
        q = (qkv[:, :HIDDEN] * scale).astype(jnp.bfloat16)   # fold 1/sqrt(d) into q
        k = qkv[:, HIDDEN:2 * HIDDEN].astype(jnp.bfloat16)
        v = qkv[:, 2 * HIDDEN:].astype(jnp.bfloat16)

        # attention over flattened rows; cross-batch pairs & padded keys are
        # killed by the precomputed additive bias.  Head outputs go straight
        # into lane slices of the VMEM scratch (no concatenate).
        for h in range(N_HEADS):
            sl = slice(h * HEAD_DIM, (h + 1) * HEAD_DIM)
            s = jax.lax.dot_general(q[:, sl], k[:, sl],
                                    (((1,), (1,)), ((), ())),
                                    preferred_element_type=jnp.float32) + bias
            s = s - jnp.max(s, axis=-1, keepdims=True)
            p = jnp.exp(s)
            p = p * pl.reciprocal(jnp.sum(p, axis=-1, keepdims=True), approx=True)
            ctx_ref[:, sl] = jnp.dot(p.astype(jnp.bfloat16), v[:, sl],
                                     preferred_element_type=jnp.float32)

        attn = jnp.dot(ctx_ref[...].astype(jnp.bfloat16), wo[...],
                       preferred_element_type=jnp.float32) + bo[...]
        h1 = _layer_norm(x + attn, g1[...], be1[...])

        ff = jnp.dot(h1.astype(jnp.bfloat16), w1[...],
                     preferred_element_type=jnp.float32) + bf1[...]
        ff = jax.nn.gelu(ff, approximate=True)  # TODO(synk): HF DeBERTa uses erf GELU
        ff = jnp.dot(ff.astype(jnp.bfloat16), w2[...],
                     preferred_element_type=jnp.float32) + bf2[...]
        x = _layer_norm(h1 + ff, g2[...], be2[...])

    o_ref[...] = x


# ------------------------------ host wrappers --------------------------------

def _full_spec(arr):
    # whole-array block; index_map returns all-zero block indices
    return pl.BlockSpec(arr.shape, lambda i, n=arr.ndim: (0,) * n)


def deberta_encoder_forward(params, input_ids, attention_mask):
    """Mirrors DebertaEncdoer.forward(inputs) with inputs={'input_ids','attention_mask'}."""
    B, S = input_ids.shape
    # embedding lookup (host-side glue), flattened to (B*S, H) token rows
    emb = params["word_emb"][input_ids.reshape(-1)]                  # (B*S, H)

    # hoisted additive attention bias: block-diagonal over batches (flattened
    # rows must not attend across batch elements) plus key-padding mask.
    row_batch = jnp.arange(B * S, dtype=jnp.int32) // S
    keep = ((row_batch[:, None] == row_batch[None, :])
            & (attention_mask.reshape(-1)[None, :] > 0))
    attn_bias = jnp.where(keep, 0.0, -1e9).astype(jnp.float32)       # (B*S, B*S)

    flat = [emb, attn_bias, params["emb_ln_g"], params["emb_ln_b"]]
    for lp in params["layers"]:
        flat += [lp[k] for k in WEIGHT_ORDER]

    out = pl.pallas_call(
        encoder_kernel,
        out_shape=jax.ShapeDtypeStruct((B * S, HIDDEN), jnp.float32),
        grid=(1,),
        in_specs=[_full_spec(a) for a in flat],
        out_specs=pl.BlockSpec((B * S, HIDDEN), lambda i: (0, 0)),
        scratch_shapes=[pltpu.VMEM((B * S, HIDDEN), jnp.float32)],
        compiler_params=pltpu.CompilerParams(
            dimension_semantics=("arbitrary",),
            vmem_limit_bytes=32 * 1024 * 1024),
    )(*flat)

    last_hidden_state = out.reshape(B, S, HIDDEN)
    # output.last_hidden_state.transpose(0, 1)[:1]  -> (1, B, H)
    t = jnp.transpose(last_hidden_state, (1, 0, 2))[:1]
    return last_hidden_state, (t, t)


def init_params(key):
    def nrm(k, shape, scale=0.02):
        return jax.random.normal(k, shape, jnp.float32) * scale

    keys = jax.random.split(key, 1 + 4 * N_LAYERS)
    params = {
        "word_emb": nrm(keys[0], (VOCAB, HIDDEN)),
        "emb_ln_g": jnp.ones((1, HIDDEN), jnp.float32),
        "emb_ln_b": jnp.zeros((1, HIDDEN), jnp.float32),
        "layers": [],
    }
    for l in range(N_LAYERS):
        k = keys[1 + 4 * l: 1 + 4 * (l + 1)]
        params["layers"].append({
            # matmul weights stored in bf16 (MXU operands); biases / LN in f32
            "wqkv": nrm(k[0], (HIDDEN, 3 * HIDDEN)).astype(jnp.bfloat16),
            "bqkv": jnp.zeros((1, 3 * HIDDEN), jnp.float32),
            "wo":   nrm(k[1], (HIDDEN, HIDDEN)).astype(jnp.bfloat16),
            "bo":   jnp.zeros((1, HIDDEN), jnp.float32),
            "g1":   jnp.ones((1, HIDDEN), jnp.float32),
            "be1":  jnp.zeros((1, HIDDEN), jnp.float32),
            "w1":   nrm(k[2], (HIDDEN, FFN_DIM)).astype(jnp.bfloat16),
            "bf1":  jnp.zeros((1, FFN_DIM), jnp.float32),
            "w2":   nrm(k[3], (FFN_DIM, HIDDEN)).astype(jnp.bfloat16),
            "bf2":  jnp.zeros((1, HIDDEN), jnp.float32),
            "g2":   jnp.ones((1, HIDDEN), jnp.float32),
            "be2":  jnp.zeros((1, HIDDEN), jnp.float32),
        })
    return params


if __name__ == "__main__":
    key = jax.random.PRNGKey(0)
    pkey, ikey = jax.random.split(key)
    params = init_params(pkey)

    input_ids = jax.random.randint(ikey, (BATCH, SEQ), 0, VOCAB, dtype=jnp.int32)
    attention_mask = jnp.ones((BATCH, SEQ), jnp.int32)

    fwd = jax.jit(deberta_encoder_forward)
    last_hidden, (pooled_a, pooled_b) = fwd(params, input_ids, attention_mask)
    jax.block_until_ready(last_hidden)
    jax.block_until_ready(pooled_a)
    jax.block_until_ready(pooled_b)

    assert last_hidden.shape == (BATCH, SEQ, HIDDEN)
    assert pooled_a.shape == (1, BATCH, HIDDEN)
    assert pooled_b.shape == (1, BATCH, HIDDEN)
    assert bool(jnp.all(jnp.isfinite(last_hidden)))
    print("KERNEL_OK")
</pallas_src>

<mosaic_0001>
module attributes {stable_mosaic.version = 11 : i64} {
  func.func @encoder_kernel(%arg0: i32, %arg1: memref<16x32xf32, #tpu.memory_space<vmem>>, %arg2: memref<16x16xf32, #tpu.memory_space<vmem>>, %arg3: memref<1x32xf32, #tpu.memory_space<vmem>>, %arg4: memref<1x32xf32, #tpu.memory_space<vmem>>, %arg5: memref<32x96xbf16, #tpu.memory_space<vmem>>, %arg6: memref<1x96xf32, #tpu.memory_space<vmem>>, %arg7: memref<32x32xbf16, #tpu.memory_space<vmem>>, %arg8: memref<1x32xf32, #tpu.memory_space<vmem>>, %arg9: memref<1x32xf32, #tpu.memory_space<vmem>>, %arg10: memref<1x32xf32, #tpu.memory_space<vmem>>, %arg11: memref<32x128xbf16, #tpu.memory_space<vmem>>, %arg12: memref<1x128xf32, #tpu.memory_space<vmem>>, %arg13: memref<128x32xbf16, #tpu.memory_space<vmem>>, %arg14: memref<1x32xf32, #tpu.memory_space<vmem>>, %arg15: memref<1x32xf32, #tpu.memory_space<vmem>>, %arg16: memref<1x32xf32, #tpu.memory_space<vmem>>, %arg17: memref<32x96xbf16, #tpu.memory_space<vmem>>, %arg18: memref<1x96xf32, #tpu.memory_space<vmem>>, %arg19: memref<32x32xbf16, #tpu.memory_space<vmem>>, %arg20: memref<1x32xf32, #tpu.memory_space<vmem>>, %arg21: memref<1x32xf32, #tpu.memory_space<vmem>>, %arg22: memref<1x32xf32, #tpu.memory_space<vmem>>, %arg23: memref<32x128xbf16, #tpu.memory_space<vmem>>, %arg24: memref<1x128xf32, #tpu.memory_space<vmem>>, %arg25: memref<128x32xbf16, #tpu.memory_space<vmem>>, %arg26: memref<1x32xf32, #tpu.memory_space<vmem>>, %arg27: memref<1x32xf32, #tpu.memory_space<vmem>>, %arg28: memref<1x32xf32, #tpu.memory_space<vmem>>, %arg29: memref<16x32xf32, #tpu.memory_space<vmem>>, %arg30: memref<16x32xf32, #tpu.memory_space<vmem>>) attributes {dimension_semantics = [#tpu.dimension_semantics<arbitrary>], iteration_bounds = array<i64: 1>, scalar_prefetch = 0 : i64, scratch_operands = 1 : i64, tpu.core_type = #tpu.core_type<tc>, window_params = [{pipeline_mode = #tpu.pipeline_mode<synchronous>, transform_indices = @transform_0, window_bounds = array<i64: 16, 32>}, {pipeline_mode = #tpu.pipeline_mode<synchronous>, transform_indices = @transform_1, window_bounds = array<i64: 16, 16>}, {pipeline_mode = #tpu.pipeline_mode<synchronous>, transform_indices = @transform_2, window_bounds = array<i64: 1, 32>}, {pipeline_mode = #tpu.pipeline_mode<synchronous>, transform_indices = @transform_3, window_bounds = array<i64: 1, 32>}, {pipeline_mode = #tpu.pipeline_mode<synchronous>, transform_indices = @transform_4, window_bounds = array<i64: 32, 96>}, {pipeline_mode = #tpu.pipeline_mode<synchronous>, transform_indices = @transform_5, window_bounds = array<i64: 1, 96>}, {pipeline_mode = #tpu.pipeline_mode<synchronous>, transform_indices = @transform_6, window_bounds = array<i64: 32, 32>}, {pipeline_mode = #tpu.pipeline_mode<synchronous>, transform_indices = @transform_7, window_bounds = array<i64: 1, 32>}, {pipeline_mode = #tpu.pipeline_mode<synchronous>, transform_indices = @transform_8, window_bounds = array<i64: 1, 32>}, {pipeline_mode = #tpu.pipeline_mode<synchronous>, transform_indices = @transform_9, window_bounds = array<i64: 1, 32>}, {pipeline_mode = #tpu.pipeline_mode<synchronous>, transform_indices = @transform_10, window_bounds = array<i64: 32, 128>}, {pipeline_mode = #tpu.pipeline_mode<synchronous>, transform_indices = @transform_11, window_bounds = array<i64: 1, 128>}, {pipeline_mode = #tpu.pipeline_mode<synchronous>, transform_indices = @transform_12, window_bounds = array<i64: 128, 32>}, {pipeline_mode = #tpu.pipeline_mode<synchronous>, transform_indices = @transform_13, window_bounds = array<i64: 1, 32>}, {pipeline_mode = #tpu.pipeline_mode<synchronous>, transform_indices = @transform_14, window_bounds = array<i64: 1, 32>}, {pipeline_mode = #tpu.pipeline_mode<synchronous>, transform_indices = @transform_15, window_bounds = array<i64: 1, 32>}, {pipeline_mode = #tpu.pipeline_mode<synchronous>, transform_indices = @transform_16, window_bounds = array<i64: 32, 96>}, {pipeline_mode = #tpu.pipeline_mode<synchronous>, transform_indices = @transform_17, window_bounds = array<i64: 1, 96>}, {pipeline_mode = #tpu.pipeline_mode<synchronous>, transform_indices = @transform_18, window_bounds = array<i64: 32, 32>}, {pipeline_mode = #tpu.pipeline_mode<synchronous>, transform_indices = @transform_19, window_bounds = array<i64: 1, 32>}, {pipeline_mode = #tpu.pipeline_mode<synchronous>, transform_indices = @transform_20, window_bounds = array<i64: 1, 32>}, {pipeline_mode = #tpu.pipeline_mode<synchronous>, transform_indices = @transform_21, window_bounds = array<i64: 1, 32>}, {pipeline_mode = #tpu.pipeline_mode<synchronous>, transform_indices = @transform_22, window_bounds = array<i64: 32, 128>}, {pipeline_mode = #tpu.pipeline_mode<synchronous>, transform_indices = @transform_23, window_bounds = array<i64: 1, 128>}, {pipeline_mode = #tpu.pipeline_mode<synchronous>, transform_indices = @transform_24, window_bounds = array<i64: 128, 32>}, {pipeline_mode = #tpu.pipeline_mode<synchronous>, transform_indices = @transform_25, window_bounds = array<i64: 1, 32>}, {pipeline_mode = #tpu.pipeline_mode<synchronous>, transform_indices = @transform_26, window_bounds = array<i64: 1, 32>}, {pipeline_mode = #tpu.pipeline_mode<synchronous>, transform_indices = @transform_27, window_bounds = array<i64: 1, 32>}, {pipeline_mode = #tpu.pipeline_mode<synchronous>, transform_indices = @transform_28, window_bounds = array<i64: 16, 32>}]} {
    %c0 = arith.constant 0 : index
    %c0_0 = arith.constant 0 : index
    %0 = vector.load %arg1[%c0, %c0_0] : memref<16x32xf32, #tpu.memory_space<vmem>>, vector<16x32xf32>
    %c0_1 = arith.constant 0 : index
    %c0_2 = arith.constant 0 : index
    %1 = vector.load %arg3[%c0_1, %c0_2] : memref<1x32xf32, #tpu.memory_space<vmem>>, vector<1x32xf32>
    %c0_3 = arith.constant 0 : index
    %c0_4 = arith.constant 0 : index
    %2 = vector.load %arg4[%c0_3, %c0_4] : memref<1x32xf32, #tpu.memory_space<vmem>>, vector<1x32xf32>
    %cst = arith.constant dense<0.000000e+00> : vector<16xf32>
    %3 = vector.multi_reduction <add>, %0, %cst [1] : vector<16x32xf32> to vector<16xf32>
    %4 = vector.shape_cast %3 : vector<16xf32> to vector<16x1xf32>
    %cst_5 = arith.constant 3.200000e+01 : f32
    %5 = vector.broadcast %cst_5 : f32 to vector<16x1xf32>
    %6 = arith.divf %4, %5 : vector<16x1xf32>
    %7 = vector.broadcast %6 : vector<16x1xf32> to vector<16x32xf32>
    %8 = arith.subf %0, %7 : vector<16x32xf32>
    %9 = arith.mulf %8, %8 : vector<16x32xf32>
    %cst_6 = arith.constant dense<0.000000e+00> : vector<16xf32>
    %10 = vector.multi_reduction <add>, %9, %cst_6 [1] : vector<16x32xf32> to vector<16xf32>
    %11 = vector.shape_cast %10 : vector<16xf32> to vector<16x1xf32>
    %cst_7 = arith.constant 3.200000e+01 : f32
    %12 = vector.broadcast %cst_7 : f32 to vector<16x1xf32>
    %13 = arith.divf %11, %12 : vector<16x1xf32>
    %14 = vector.broadcast %6 : vector<16x1xf32> to vector<16x32xf32>
    %15 = arith.subf %0, %14 : vector<16x32xf32>
    %cst_8 = arith.constant 1.000000e-07 : f32
    %16 = vector.broadcast %cst_8 : f32 to vector<16x1xf32>
    %17 = arith.addf %13, %16 : vector<16x1xf32>
    %18 = math.rsqrt %17 : vector<16x1xf32>
    %19 = vector.broadcast %18 : vector<16x1xf32> to vector<16x32xf32>
    %20 = arith.mulf %15, %19 : vector<16x32xf32>
    %21 = vector.broadcast %1 : vector<1x32xf32> to vector<16x32xf32>
    %22 = arith.mulf %20, %21 : vector<16x32xf32>
    %23 = vector.broadcast %2 : vector<1x32xf32> to vector<16x32xf32>
    %24 = arith.addf %22, %23 : vector<16x32xf32>
    %c0_9 = arith.constant 0 : index
    %c0_10 = arith.constant 0 : index
    %25 = vector.load %arg2[%c0_9, %c0_10] : memref<16x16xf32, #tpu.memory_space<vmem>>, vector<16x16xf32>
    %26 = arith.truncf %24 : vector<16x32xf32> to vector<16x32xbf16>
    %c0_11 = arith.constant 0 : index
    %c0_12 = arith.constant 0 : index
    %27 = vector.load %arg5[%c0_11, %c0_12] : memref<32x96xbf16, #tpu.memory_space<vmem>>, vector<32x96xbf16>
    %cst_13 = arith.constant dense<0.000000e+00> : vector<16x96xf32>
    %28 = tpu.matmul %26, %27, %cst_13 {dimension_numbers = #tpu.dot_dimension_numbers<[1], [0], [0], [1], [0, 0, 1, 1], [], []>} : vector<16x32xbf16>, vector<32x96xbf16>, vector<16x96xf32> -> vector<16x96xf32>
    %c0_14 = arith.constant 0 : index
    %c0_15 = arith.constant 0 : index
    %29 = vector.load %arg6[%c0_14, %c0_15] : memref<1x96xf32, #tpu.memory_space<vmem>>, vector<1x96xf32>
    %30 = vector.broadcast %29 : vector<1x96xf32> to vector<16x96xf32>
    %31 = arith.addf %28, %30 : vector<16x96xf32>
    %32 = vector.extract_strided_slice %31 {offsets = [0, 0], sizes = [16, 32], strides = [1, 1]} : vector<16x96xf32> to vector<16x32xf32>
    %cst_16 = arith.constant 0.353553385 : f32
    %33 = vector.broadcast %cst_16 : f32 to vector<16x32xf32>
    %34 = arith.mulf %32, %33 : vector<16x32xf32>
    %35 = arith.truncf %34 : vector<16x32xf32> to vector<16x32xbf16>
    %36 = vector.extract_strided_slice %31 {offsets = [0, 32], sizes = [16, 32], strides = [1, 1]} : vector<16x96xf32> to vector<16x32xf32>
    %37 = arith.truncf %36 : vector<16x32xf32> to vector<16x32xbf16>
    %38 = vector.extract_strided_slice %31 {offsets = [0, 64], sizes = [16, 32], strides = [1, 1]} : vector<16x96xf32> to vector<16x32xf32>
    %39 = arith.truncf %38 : vector<16x32xf32> to vector<16x32xbf16>
    %40 = vector.extract_strided_slice %35 {offsets = [0, 0], sizes = [16, 8], strides = [1, 1]} : vector<16x32xbf16> to vector<16x8xbf16>
    %41 = vector.extract_strided_slice %37 {offsets = [0, 0], sizes = [16, 8], strides = [1, 1]} : vector<16x32xbf16> to vector<16x8xbf16>
    %cst_17 = arith.constant dense<0.000000e+00> : vector<16x16xf32>
    %42 = tpu.matmul %40, %41, %cst_17 {dimension_numbers = #tpu.dot_dimension_numbers<[1], [1], [0], [0], [0, 0, 1, 0], [], []>} : vector<16x8xbf16>, vector<16x8xbf16>, vector<16x16xf32> -> vector<16x16xf32>
    %43 = arith.addf %42, %25 : vector<16x16xf32>
    %cst_18 = arith.constant dense<0xFF800000> : vector<16xf32>
    %44 = vector.multi_reduction <maximumf>, %43, %cst_18 [1] : vector<16x16xf32> to vector<16xf32>
    %45 = vector.shape_cast %44 : vector<16xf32> to vector<16x1xf32>
    %46 = vector.broadcast %45 : vector<16x1xf32> to vector<16x16xf32>
    %47 = arith.subf %43, %46 : vector<16x16xf32>
    %48 = math.exp %47 : vector<16x16xf32>
    %cst_19 = arith.constant dense<0.000000e+00> : vector<16xf32>
    %49 = vector.multi_reduction <add>, %48, %cst_19 [1] : vector<16x16xf32> to vector<16xf32>
    %50 = vector.shape_cast %49 : vector<16xf32> to vector<16x1xf32>
    %51 = tpu.reciprocal %50 {approx = true} : vector<16x1xf32> -> vector<16x1xf32>
    %52 = vector.broadcast %51 : vector<16x1xf32> to vector<16x16xf32>
    %53 = arith.mulf %48, %52 : vector<16x16xf32>
    %54 = arith.truncf %53 : vector<16x16xf32> to vector<16x16xbf16>
    %55 = vector.extract_strided_slice %39 {offsets = [0, 0], sizes = [16, 8], strides = [1, 1]} : vector<16x32xbf16> to vector<16x8xbf16>
    %cst_20 = arith.constant dense<0.000000e+00> : vector<16x8xf32>
    %56 = tpu.matmul %54, %55, %cst_20 {dimension_numbers = #tpu.dot_dimension_numbers<[1], [0], [0], [1], [0, 0, 1, 1], [], []>} : vector<16x16xbf16>, vector<16x8xbf16>, vector<16x8xf32> -> vector<16x8xf32>
    %c0_21 = arith.constant 0 : index
    %c0_22 = arith.constant 0 : index
    %57 = vector.load %arg30[%c0_21, %c0_22] : memref<16x32xf32, #tpu.memory_space<vmem>>, vector<16x8xf32>
    tpu.vector_store %arg30[%c0_21, %c0_22], %56 {strides = array<i32>} : memref<16x32xf32, #tpu.memory_space<vmem>>, vector<16x8xf32>,
    %58 = vector.extract_strided_slice %35 {offsets = [0, 8], sizes = [16, 8], strides = [1, 1]} : vector<16x32xbf16> to vector<16x8xbf16>
    %59 = vector.extract_strided_slice %37 {offsets = [0, 8], sizes = [16, 8], strides = [1, 1]} : vector<16x32xbf16> to vector<16x8xbf16>
    %cst_23 = arith.constant dense<0.000000e+00> : vector<16x16xf32>
    %60 = tpu.matmul %58, %59, %cst_23 {dimension_numbers = #tpu.dot_dimension_numbers<[1], [1], [0], [0], [0, 0, 1, 0], [], []>} : vector<16x8xbf16>, vector<16x8xbf16>, vector<16x16xf32> -> vector<16x16xf32>
    %61 = arith.addf %60, %25 : vector<16x16xf32>
    %cst_24 = arith.constant dense<0xFF800000> : vector<16xf32>
    %62 = vector.multi_reduction <maximumf>, %61, %cst_24 [1] : vector<16x16xf32> to vector<16xf32>
    %63 = vector.shape_cast %62 : vector<16xf32> to vector<16x1xf32>
    %64 = vector.broadcast %63 : vector<16x1xf32> to vector<16x16xf32>
    %65 = arith.subf %61, %64 : vector<16x16xf32>
    %66 = math.exp %65 : vector<16x16xf32>
    %cst_25 = arith.constant dense<0.000000e+00> : vector<16xf32>
    %67 = vector.multi_reduction <add>, %66, %cst_25 [1] : vector<16x16xf32> to vector<16xf32>
    %68 = vector.shape_cast %67 : vector<16xf32> to vector<16x1xf32>
    %69 = tpu.reciprocal %68 {approx = true} : vector<16x1xf32> -> vector<16x1xf32>
    %70 = vector.broadcast %69 : vector<16x1xf32> to vector<16x16xf32>
    %71 = arith.mulf %66, %70 : vector<16x16xf32>
    %72 = arith.truncf %71 : vector<16x16xf32> to vector<16x16xbf16>
    %73 = vector.extract_strided_slice %39 {offsets = [0, 8], sizes = [16, 8], strides = [1, 1]} : vector<16x32xbf16> to vector<16x8xbf16>
    %cst_26 = arith.constant dense<0.000000e+00> : vector<16x8xf32>
    %74 = tpu.matmul %72, %73, %cst_26 {dimension_numbers = #tpu.dot_dimension_numbers<[1], [0], [0], [1], [0, 0, 1, 1], [], []>} : vector<16x16xbf16>, vector<16x8xbf16>, vector<16x8xf32> -> vector<16x8xf32>
    %c0_27 = arith.constant 0 : index
    %c8 = arith.constant 8 : index
    %75 = vector.load %arg30[%c0_27, %c8] : memref<16x32xf32, #tpu.memory_space<vmem>>, vector<16x8xf32>
    tpu.vector_store %arg30[%c0_27, %c8], %74 {strides = array<i32>} : memref<16x32xf32, #tpu.memory_space<vmem>>, vector<16x8xf32>,
    %76 = vector.extract_strided_slice %35 {offsets = [0, 16], sizes = [16, 8], strides = [1, 1]} : vector<16x32xbf16> to vector<16x8xbf16>
    %77 = vector.extract_strided_slice %37 {offsets = [0, 16], sizes = [16, 8], strides = [1, 1]} : vector<16x32xbf16> to vector<16x8xbf16>
    %cst_28 = arith.constant dense<0.000000e+00> : vector<16x16xf32>
    %78 = tpu.matmul %76, %77, %cst_28 {dimension_numbers = #tpu.dot_dimension_numbers<[1], [1], [0], [0], [0, 0, 1, 0], [], []>} : vector<16x8xbf16>, vector<16x8xbf16>, vector<16x16xf32> -> vector<16x16xf32>
    %79 = arith.addf %78, %25 : vector<16x16xf32>
    %cst_29 = arith.constant dense<0xFF800000> : vector<16xf32>
    %80 = vector.multi_reduction <maximumf>, %79, %cst_29 [1] : vector<16x16xf32> to vector<16xf32>
    %81 = vector.shape_cast %80 : vector<16xf32> to vector<16x1xf32>
    %82 = vector.broadcast %81 : vector<16x1xf32> to vector<16x16xf32>
    %83 = arith.subf %79, %82 : vector<16x16xf32>
    %84 = math.exp %83 : vector<16x16xf32>
    %cst_30 = arith.constant dense<0.000000e+00> : vector<16xf32>
    %85 = vector.multi_reduction <add>, %84, %cst_30 [1] : vector<16x16xf32> to vector<16xf32>
    %86 = vector.shape_cast %85 : vector<16xf32> to vector<16x1xf32>
    %87 = tpu.reciprocal %86 {approx = true} : vector<16x1xf32> -> vector<16x1xf32>
    %88 = vector.broadcast %87 : vector<16x1xf32> to vector<16x16xf32>
    %89 = arith.mulf %84, %88 : vector<16x16xf32>
    %90 = arith.truncf %89 : vector<16x16xf32> to vector<16x16xbf16>
    %91 = vector.extract_strided_slice %39 {offsets = [0, 16], sizes = [16, 8], strides = [1, 1]} : vector<16x32xbf16> to vector<16x8xbf16>
    %cst_31 = arith.constant dense<0.000000e+00> : vector<16x8xf32>
    %92 = tpu.matmul %90, %91, %cst_31 {dimension_numbers = #tpu.dot_dimension_numbers<[1], [0], [0], [1], [0, 0, 1, 1], [], []>} : vector<16x16xbf16>, vector<16x8xbf16>, vector<16x8xf32> -> vector<16x8xf32>
    %c0_32 = arith.constant 0 : index
    %c16 = arith.constant 16 : index
    %93 = vector.load %arg30[%c0_32, %c16] : memref<16x32xf32, #tpu.memory_space<vmem>>, vector<16x8xf32>
    tpu.vector_store %arg30[%c0_32, %c16], %92 {strides = array<i32>} : memref<16x32xf32, #tpu.memory_space<vmem>>, vector<16x8xf32>,
    %94 = vector.extract_strided_slice %35 {offsets = [0, 24], sizes = [16, 8], strides = [1, 1]} : vector<16x32xbf16> to vector<16x8xbf16>
    %95 = vector.extract_strided_slice %37 {offsets = [0, 24], sizes = [16, 8], strides = [1, 1]} : vector<16x32xbf16> to vector<16x8xbf16>
    %cst_33 = arith.constant dense<0.000000e+00> : vector<16x16xf32>
    %96 = tpu.matmul %94, %95, %cst_33 {dimension_numbers = #tpu.dot_dimension_numbers<[1], [1], [0], [0], [0, 0, 1, 0], [], []>} : vector<16x8xbf16>, vector<16x8xbf16>, vector<16x16xf32> -> vector<16x16xf32>
    %97 = arith.addf %96, %25 : vector<16x16xf32>
    %cst_34 = arith.constant dense<0xFF800000> : vector<16xf32>
    %98 = vector.multi_reduction <maximumf>, %97, %cst_34 [1] : vector<16x16xf32> to vector<16xf32>
    %99 = vector.shape_cast %98 : vector<16xf32> to vector<16x1xf32>
    %100 = vector.broadcast %99 : vector<16x1xf32> to vector<16x16xf32>
    %101 = arith.subf %97, %100 : vector<16x16xf32>
    %102 = math.exp %101 : vector<16x16xf32>
    %cst_35 = arith.constant dense<0.000000e+00> : vector<16xf32>
    %103 = vector.multi_reduction <add>, %102, %cst_35 [1] : vector<16x16xf32> to vector<16xf32>
    %104 = vector.shape_cast %103 : vector<16xf32> to vector<16x1xf32>
    %105 = tpu.reciprocal %104 {approx = true} : vector<16x1xf32> -> vector<16x1xf32>
    %106 = vector.broadcast %105 : vector<16x1xf32> to vector<16x16xf32>
    %107 = arith.mulf %102, %106 : vector<16x16xf32>
    %108 = arith.truncf %107 : vector<16x16xf32> to vector<16x16xbf16>
    %109 = vector.extract_strided_slice %39 {offsets = [0, 24], sizes = [16, 8], strides = [1, 1]} : vector<16x32xbf16> to vector<16x8xbf16>
    %cst_36 = arith.constant dense<0.000000e+00> : vector<16x8xf32>
    %110 = tpu.matmul %108, %109, %cst_36 {dimension_numbers = #tpu.dot_dimension_numbers<[1], [0], [0], [1], [0, 0, 1, 1], [], []>} : vector<16x16xbf16>, vector<16x8xbf16>, vector<16x8xf32> -> vector<16x8xf32>
    %c0_37 = arith.constant 0 : index
    %c24 = arith.constant 24 : index
    %111 = vector.load %arg30[%c0_37, %c24] : memref<16x32xf32, #tpu.memory_space<vmem>>, vector<16x8xf32>
    tpu.vector_store %arg30[%c0_37, %c24], %110 {strides = array<i32>} : memref<16x32xf32, #tpu.memory_space<vmem>>, vector<16x8xf32>,
    %c0_38 = arith.constant 0 : index
    %c0_39 = arith.constant 0 : index
    %112 = vector.load %arg30[%c0_38, %c0_39] : memref<16x32xf32, #tpu.memory_space<vmem>>, vector<16x32xf32>
    %113 = arith.truncf %112 : vector<16x32xf32> to vector<16x32xbf16>
    %c0_40 = arith.constant 0 : index
    %c0_41 = arith.constant 0 : index
    %114 = vector.load %arg7[%c0_40, %c0_41] : memref<32x32xbf16, #tpu.memory_space<vmem>>, vector<32x32xbf16>
    %cst_42 = arith.constant dense<0.000000e+00> : vector<16x32xf32>
    %115 = tpu.matmul %113, %114, %cst_42 {dimension_numbers = #tpu.dot_dimension_numbers<[1], [0], [0], [1], [0, 0, 1, 1], [], []>} : vector<16x32xbf16>, vector<32x32xbf16>, vector<16x32xf32> -> vector<16x32xf32>
    %c0_43 = arith.constant 0 : index
    %c0_44 = arith.constant 0 : index
    %116 = vector.load %arg8[%c0_43, %c0_44] : memref<1x32xf32, #tpu.memory_space<vmem>>, vector<1x32xf32>
    %117 = vector.broadcast %116 : vector<1x32xf32> to vector<16x32xf32>
    %118 = arith.addf %115, %117 : vector<16x32xf32>
    %119 = arith.addf %24, %118 : vector<16x32xf32>
    %c0_45 = arith.constant 0 : index
    %c0_46 = arith.constant 0 : index
    %120 = vector.load %arg9[%c0_45, %c0_46] : memref<1x32xf32, #tpu.memory_space<vmem>>, vector<1x32xf32>
    %c0_47 = arith.constant 0 : index
    %c0_48 = arith.constant 0 : index
    %121 = vector.load %arg10[%c0_47, %c0_48] : memref<1x32xf32, #tpu.memory_space<vmem>>, vector<1x32xf32>
    %cst_49 = arith.constant dense<0.000000e+00> : vector<16xf32>
    %122 = vector.multi_reduction <add>, %119, %cst_49 [1] : vector<16x32xf32> to vector<16xf32>
    %123 = vector.shape_cast %122 : vector<16xf32> to vector<16x1xf32>
    %cst_50 = arith.constant 3.200000e+01 : f32
    %124 = vector.broadcast %cst_50 : f32 to vector<16x1xf32>
    %125 = arith.divf %123, %124 : vector<16x1xf32>
    %126 = vector.broadcast %125 : vector<16x1xf32> to vector<16x32xf32>
    %127 = arith.subf %119, %126 : vector<16x32xf32>
    %128 = arith.mulf %127, %127 : vector<16x32xf32>
    %cst_51 = arith.constant dense<0.000000e+00> : vector<16xf32>
    %129 = vector.multi_reduction <add>, %128, %cst_51 [1] : vector<16x32xf32> to vector<16xf32>
    %130 = vector.shape_cast %129 : vector<16xf32> to vector<16x1xf32>
    %cst_52 = arith.constant 3.200000e+01 : f32
    %131 = vector.broadcast %cst_52 : f32 to vector<16x1xf32>
    %132 = arith.divf %130, %131 : vector<16x1xf32>
    %133 = vector.broadcast %125 : vector<16x1xf32> to vector<16x32xf32>
    %134 = arith.subf %119, %133 : vector<16x32xf32>
    %cst_53 = arith.constant 1.000000e-07 : f32
    %135 = vector.broadcast %cst_53 : f32 to vector<16x1xf32>
    %136 = arith.addf %132, %135 : vector<16x1xf32>
    %137 = math.rsqrt %136 : vector<16x1xf32>
    %138 = vector.broadcast %137 : vector<16x1xf32> to vector<16x32xf32>
    %139 = arith.mulf %134, %138 : vector<16x32xf32>
    %140 = vector.broadcast %120 : vector<1x32xf32> to vector<16x32xf32>
    %141 = arith.mulf %139, %140 : vector<16x32xf32>
    %142 = vector.broadcast %121 : vector<1x32xf32> to vector<16x32xf32>
    %143 = arith.addf %141, %142 : vector<16x32xf32>
    %144 = arith.truncf %143 : vector<16x32xf32> to vector<16x32xbf16>
    %c0_54 = arith.constant 0 : index
    %c0_55 = arith.constant 0 : index
    %145 = vector.load %arg11[%c0_54, %c0_55] : memref<32x128xbf16, #tpu.memory_space<vmem>>, vector<32x128xbf16>
    %cst_56 = arith.constant dense<0.000000e+00> : vector<16x128xf32>
    %146 = tpu.matmul %144, %145, %cst_56 {dimension_numbers = #tpu.dot_dimension_numbers<[1], [0], [0], [1], [0, 0, 1, 1], [], []>} : vector<16x32xbf16>, vector<32x128xbf16>, vector<16x128xf32> -> vector<16x128xf32>
    %c0_57 = arith.constant 0 : index
    %c0_58 = arith.constant 0 : index
    %147 = vector.load %arg12[%c0_57, %c0_58] : memref<1x128xf32, #tpu.memory_space<vmem>>, vector<1x128xf32>
    %148 = vector.broadcast %147 : vector<1x128xf32> to vector<16x128xf32>
    %149 = arith.addf %146, %148 : vector<16x128xf32>
    %150 = arith.mulf %149, %149 : vector<16x128xf32>
    %151 = arith.mulf %149, %150 : vector<16x128xf32>
    %cst_59 = arith.constant 4.471500e-02 : f32
    %152 = vector.broadcast %cst_59 : f32 to vector<16x128xf32>
    %153 = arith.mulf %152, %151 : vector<16x128xf32>
    %154 = arith.addf %149, %153 : vector<16x128xf32>
    %cst_60 = arith.constant 0.797884583 : f32
    %155 = vector.broadcast %cst_60 : f32 to vector<16x128xf32>
    %156 = arith.mulf %155, %154 : vector<16x128xf32>
    %157 = math.tanh %156 : vector<16x128xf32>
    %cst_61 = arith.constant 1.000000e+00 : f32
    %158 = vector.broadcast %cst_61 : f32 to vector<16x128xf32>
    %159 = arith.addf %158, %157 : vector<16x128xf32>
    %cst_62 = arith.constant 5.000000e-01 : f32
    %160 = vector.broadcast %cst_62 : f32 to vector<16x128xf32>
    %161 = arith.mulf %160, %159 : vector<16x128xf32>
    %162 = arith.mulf %149, %161 : vector<16x128xf32>
    %163 = arith.truncf %162 : vector<16x128xf32> to vector<16x128xbf16>
    %c0_63 = arith.constant 0 : index
    %c0_64 = arith.constant 0 : index
    %164 = vector.load %arg13[%c0_63, %c0_64] : memref<128x32xbf16, #tpu.memory_space<vmem>>, vector<128x32xbf16>
    %cst_65 = arith.constant dense<0.000000e+00> : vector<16x32xf32>
    %165 = tpu.matmul %163, %164, %cst_65 {dimension_numbers = #tpu.dot_dimension_numbers<[1], [0], [0], [1], [0, 0, 1, 1], [], []>} : vector<16x128xbf16>, vector<128x32xbf16>, vector<16x32xf32> -> vector<16x32xf32>
    %c0_66 = arith.constant 0 : index
    %c0_67 = arith.constant 0 : index
    %166 = vector.load %arg14[%c0_66, %c0_67] : memref<1x32xf32, #tpu.memory_space<vmem>>, vector<1x32xf32>
    %167 = vector.broadcast %166 : vector<1x32xf32> to vector<16x32xf32>
    %168 = arith.addf %165, %167 : vector<16x32xf32>
    %169 = arith.addf %143, %168 : vector<16x32xf32>
    %c0_68 = arith.constant 0 : index
    %c0_69 = arith.constant 0 : index
    %170 = vector.load %arg15[%c0_68, %c0_69] : memref<1x32xf32, #tpu.memory_space<vmem>>, vector<1x32xf32>
    %c0_70 = arith.constant 0 : index
    %c0_71 = arith.constant 0 : index
    %171 = vector.load %arg16[%c0_70, %c0_71] : memref<1x32xf32, #tpu.memory_space<vmem>>, vector<1x32xf32>
    %cst_72 = arith.constant dense<0.000000e+00> : vector<16xf32>
    %172 = vector.multi_reduction <add>, %169, %cst_72 [1] : vector<16x32xf32> to vector<16xf32>
    %173 = vector.shape_cast %172 : vector<16xf32> to vector<16x1xf32>
    %cst_73 = arith.constant 3.200000e+01 : f32
    %174 = vector.broadcast %cst_73 : f32 to vector<16x1xf32>
    %175 = arith.divf %173, %174 : vector<16x1xf32>
    %176 = vector.broadcast %175 : vector<16x1xf32> to vector<16x32xf32>
    %177 = arith.subf %169, %176 : vector<16x32xf32>
    %178 = arith.mulf %177, %177 : vector<16x32xf32>
    %cst_74 = arith.constant dense<0.000000e+00> : vector<16xf32>
    %179 = vector.multi_reduction <add>, %178, %cst_74 [1] : vector<16x32xf32> to vector<16xf32>
    %180 = vector.shape_cast %179 : vector<16xf32> to vector<16x1xf32>
    %cst_75 = arith.constant 3.200000e+01 : f32
    %181 = vector.broadcast %cst_75 : f32 to vector<16x1xf32>
    %182 = arith.divf %180, %181 : vector<16x1xf32>
    %183 = vector.broadcast %175 : vector<16x1xf32> to vector<16x32xf32>
    %184 = arith.subf %169, %183 : vector<16x32xf32>
    %cst_76 = arith.constant 1.000000e-07 : f32
    %185 = vector.broadcast %cst_76 : f32 to vector<16x1xf32>
    %186 = arith.addf %182, %185 : vector<16x1xf32>
    %187 = math.rsqrt %186 : vector<16x1xf32>
    %188 = vector.broadcast %187 : vector<16x1xf32> to vector<16x32xf32>
    %189 = arith.mulf %184, %188 : vector<16x32xf32>
    %190 = vector.broadcast %170 : vector<1x32xf32> to vector<16x32xf32>
    %191 = arith.mulf %189, %190 : vector<16x32xf32>
    %192 = vector.broadcast %171 : vector<1x32xf32> to vector<16x32xf32>
    %193 = arith.addf %191, %192 : vector<16x32xf32>
    %194 = arith.truncf %193 : vector<16x32xf32> to vector<16x32xbf16>
    %c0_77 = arith.constant 0 : index
    %c0_78 = arith.constant 0 : index
    %195 = vector.load %arg17[%c0_77, %c0_78] : memref<32x96xbf16, #tpu.memory_space<vmem>>, vector<32x96xbf16>
    %cst_79 = arith.constant dense<0.000000e+00> : vector<16x96xf32>
    %196 = tpu.matmul %194, %195, %cst_79 {dimension_numbers = #tpu.dot_dimension_numbers<[1], [0], [0], [1], [0, 0, 1, 1], [], []>} : vector<16x32xbf16>, vector<32x96xbf16>, vector<16x96xf32> -> vector<16x96xf32>
    %c0_80 = arith.constant 0 : index
    %c0_81 = arith.constant 0 : index
    %197 = vector.load %arg18[%c0_80, %c0_81] : memref<1x96xf32, #tpu.memory_space<vmem>>, vector<1x96xf32>
    %198 = vector.broadcast %197 : vector<1x96xf32> to vector<16x96xf32>
    %199 = arith.addf %196, %198 : vector<16x96xf32>
    %200 = vector.extract_strided_slice %199 {offsets = [0, 0], sizes = [16, 32], strides = [1, 1]} : vector<16x96xf32> to vector<16x32xf32>
    %cst_82 = arith.constant 0.353553385 : f32
    %201 = vector.broadcast %cst_82 : f32 to vector<16x32xf32>
    %202 = arith.mulf %200, %201 : vector<16x32xf32>
    %203 = arith.truncf %202 : vector<16x32xf32> to vector<16x32xbf16>
    %204 = vector.extract_strided_slice %199 {offsets = [0, 32], sizes = [16, 32], strides = [1, 1]} : vector<16x96xf32> to vector<16x32xf32>
    %205 = arith.truncf %204 : vector<16x32xf32> to vector<16x32xbf16>
    %206 = vector.extract_strided_slice %199 {offsets = [0, 64], sizes = [16, 32], strides = [1, 1]} : vector<16x96xf32> to vector<16x32xf32>
    %207 = arith.truncf %206 : vector<16x32xf32> to vector<16x32xbf16>
    %208 = vector.extract_strided_slice %203 {offsets = [0, 0], sizes = [16, 8], strides = [1, 1]} : vector<16x32xbf16> to vector<16x8xbf16>
    %209 = vector.extract_strided_slice %205 {offsets = [0, 0], sizes = [16, 8], strides = [1, 1]} : vector<16x32xbf16> to vector<16x8xbf16>
    %cst_83 = arith.constant dense<0.000000e+00> : vector<16x16xf32>
    %210 = tpu.matmul %208, %209, %cst_83 {dimension_numbers = #tpu.dot_dimension_numbers<[1], [1], [0], [0], [0, 0, 1, 0], [], []>} : vector<16x8xbf16>, vector<16x8xbf16>, vector<16x16xf32> -> vector<16x16xf32>
    %211 = arith.addf %210, %25 : vector<16x16xf32>
    %cst_84 = arith.constant dense<0xFF800000> : vector<16xf32>
    %212 = vector.multi_reduction <maximumf>, %211, %cst_84 [1] : vector<16x16xf32> to vector<16xf32>
    %213 = vector.shape_cast %212 : vector<16xf32> to vector<16x1xf32>
    %214 = vector.broadcast %213 : vector<16x1xf32> to vector<16x16xf32>
    %215 = arith.subf %211, %214 : vector<16x16xf32>
    %216 = math.exp %215 : vector<16x16xf32>
    %cst_85 = arith.constant dense<0.000000e+00> : vector<16xf32>
    %217 = vector.multi_reduction <add>, %216, %cst_85 [1] : vector<16x16xf32> to vector<16xf32>
    %218 = vector.shape_cast %217 : vector<16xf32> to vector<16x1xf32>
    %219 = tpu.reciprocal %218 {approx = true} : vector<16x1xf32> -> vector<16x1xf32>
    %220 = vector.broadcast %219 : vector<16x1xf32> to vector<16x16xf32>
    %221 = arith.mulf %216, %220 : vector<16x16xf32>
    %222 = arith.truncf %221 : vector<16x16xf32> to vector<16x16xbf16>
    %223 = vector.extract_strided_slice %207 {offsets = [0, 0], sizes = [16, 8], strides = [1, 1]} : vector<16x32xbf16> to vector<16x8xbf16>
    %cst_86 = arith.constant dense<0.000000e+00> : vector<16x8xf32>
    %224 = tpu.matmul %222, %223, %cst_86 {dimension_numbers = #tpu.dot_dimension_numbers<[1], [0], [0], [1], [0, 0, 1, 1], [], []>} : vector<16x16xbf16>, vector<16x8xbf16>, vector<16x8xf32> -> vector<16x8xf32>
    %c0_87 = arith.constant 0 : index
    %c0_88 = arith.constant 0 : index
    %225 = vector.load %arg30[%c0_87, %c0_88] : memref<16x32xf32, #tpu.memory_space<vmem>>, vector<16x8xf32>
    tpu.vector_store %arg30[%c0_87, %c0_88], %224 {strides = array<i32>} : memref<16x32xf32, #tpu.memory_space<vmem>>, vector<16x8xf32>,
    %226 = vector.extract_strided_slice %203 {offsets = [0, 8], sizes = [16, 8], strides = [1, 1]} : vector<16x32xbf16> to vector<16x8xbf16>
    %227 = vector.extract_strided_slice %205 {offsets = [0, 8], sizes = [16, 8], strides = [1, 1]} : vector<16x32xbf16> to vector<16x8xbf16>
    %cst_89 = arith.constant dense<0.000000e+00> : vector<16x16xf32>
    %228 = tpu.matmul %226, %227, %cst_89 {dimension_numbers = #tpu.dot_dimension_numbers<[1], [1], [0], [0], [0, 0, 1, 0], [], []>} : vector<16x8xbf16>, vector<16x8xbf16>, vector<16x16xf32> -> vector<16x16xf32>
    %229 = arith.addf %228, %25 : vector<16x16xf32>
    %cst_90 = arith.constant dense<0xFF800000> : vector<16xf32>
    %230 = vector.multi_reduction <maximumf>, %229, %cst_90 [1] : vector<16x16xf32> to vector<16xf32>
    %231 = vector.shape_cast %230 : vector<16xf32> to vector<16x1xf32>
    %232 = vector.broadcast %231 : vector<16x1xf32> to vector<16x16xf32>
    %233 = arith.subf %229, %232 : vector<16x16xf32>
    %234 = math.exp %233 : vector<16x16xf32>
    %cst_91 = arith.constant dense<0.000000e+00> : vector<16xf32>
    %235 = vector.multi_reduction <add>, %234, %cst_91 [1] : vector<16x16xf32> to vector<16xf32>
    %236 = vector.shape_cast %235 : vector<16xf32> to vector<16x1xf32>
    %237 = tpu.reciprocal %236 {approx = true} : vector<16x1xf32> -> vector<16x1xf32>
    %238 = vector.broadcast %237 : vector<16x1xf32> to vector<16x16xf32>
    %239 = arith.mulf %234, %238 : vector<16x16xf32>
    %240 = arith.truncf %239 : vector<16x16xf32> to vector<16x16xbf16>
    %241 = vector.extract_strided_slice %207 {offsets = [0, 8], sizes = [16, 8], strides = [1, 1]} : vector<16x32xbf16> to vector<16x8xbf16>
    %cst_92 = arith.constant dense<0.000000e+00> : vector<16x8xf32>
    %242 = tpu.matmul %240, %241, %cst_92 {dimension_numbers = #tpu.dot_dimension_numbers<[1], [0], [0], [1], [0, 0, 1, 1], [], []>} : vector<16x16xbf16>, vector<16x8xbf16>, vector<16x8xf32> -> vector<16x8xf32>
    %c0_93 = arith.constant 0 : index
    %c8_94 = arith.constant 8 : index
    %243 = vector.load %arg30[%c0_93, %c8_94] : memref<16x32xf32, #tpu.memory_space<vmem>>, vector<16x8xf32>
    tpu.vector_store %arg30[%c0_93, %c8_94], %242 {strides = array<i32>} : memref<16x32xf32, #tpu.memory_space<vmem>>, vector<16x8xf32>,
    %244 = vector.extract_strided_slice %203 {offsets = [0, 16], sizes = [16, 8], strides = [1, 1]} : vector<16x32xbf16> to vector<16x8xbf16>
    %245 = vector.extract_strided_slice %205 {offsets = [0, 16], sizes = [16, 8], strides = [1, 1]} : vector<16x32xbf16> to vector<16x8xbf16>
    %cst_95 = arith.constant dense<0.000000e+00> : vector<16x16xf32>
    %246 = tpu.matmul %244, %245, %cst_95 {dimension_numbers = #tpu.dot_dimension_numbers<[1], [1], [0], [0], [0, 0, 1, 0], [], []>} : vector<16x8xbf16>, vector<16x8xbf16>, vector<16x16xf32> -> vector<16x16xf32>
    %247 = arith.addf %246, %25 : vector<16x16xf32>
    %cst_96 = arith.constant dense<0xFF800000> : vector<16xf32>
    %248 = vector.multi_reduction <maximumf>, %247, %cst_96 [1] : vector<16x16xf32> to vector<16xf32>
    %249 = vector.shape_cast %248 : vector<16xf32> to vector<16x1xf32>
    %250 = vector.broadcast %249 : vector<16x1xf32> to vector<16x16xf32>
    %251 = arith.subf %247, %250 : vector<16x16xf32>
    %252 = math.exp %251 : vector<16x16xf32>
    %cst_97 = arith.constant dense<0.000000e+00> : vector<16xf32>
    %253 = vector.multi_reduction <add>, %252, %cst_97 [1] : vector<16x16xf32> to vector<16xf32>
    %254 = vector.shape_cast %253 : vector<16xf32> to vector<16x1xf32>
    %255 = tpu.reciprocal %254 {approx = true} : vector<16x1xf32> -> vector<16x1xf32>
    %256 = vector.broadcast %255 : vector<16x1xf32> to vector<16x16xf32>
    %257 = arith.mulf %252, %256 : vector<16x16xf32>
    %258 = arith.truncf %257 : vector<16x16xf32> to vector<16x16xbf16>
    %259 = vector.extract_strided_slice %207 {offsets = [0, 16], sizes = [16, 8], strides = [1, 1]} : vector<16x32xbf16> to vector<16x8xbf16>
    %cst_98 = arith.constant dense<0.000000e+00> : vector<16x8xf32>
    %260 = tpu.matmul %258, %259, %cst_98 {dimension_numbers = #tpu.dot_dimension_numbers<[1], [0], [0], [1], [0, 0, 1, 1], [], []>} : vector<16x16xbf16>, vector<16x8xbf16>, vector<16x8xf32> -> vector<16x8xf32>
    %c0_99 = arith.constant 0 : index
    %c16_100 = arith.constant 16 : index
    %261 = vector.load %arg30[%c0_99, %c16_100] : memref<16x32xf32, #tpu.memory_space<vmem>>, vector<16x8xf32>
    tpu.vector_store %arg30[%c0_99, %c16_100], %260 {strides = array<i32>} : memref<16x32xf32, #tpu.memory_space<vmem>>, vector<16x8xf32>,
    %262 = vector.extract_strided_slice %203 {offsets = [0, 24], sizes = [16, 8], strides = [1, 1]} : vector<16x32xbf16> to vector<16x8xbf16>
    %263 = vector.extract_strided_slice %205 {offsets = [0, 24], sizes = [16, 8], strides = [1, 1]} : vector<16x32xbf16> to vector<16x8xbf16>
    %cst_101 = arith.constant dense<0.000000e+00> : vector<16x16xf32>
    %264 = tpu.matmul %262, %263, %cst_101 {dimension_numbers = #tpu.dot_dimension_numbers<[1], [1], [0], [0], [0, 0, 1, 0], [], []>} : vector<16x8xbf16>, vector<16x8xbf16>, vector<16x16xf32> -> vector<16x16xf32>
    %265 = arith.addf %264, %25 : vector<16x16xf32>
    %cst_102 = arith.constant dense<0xFF800000> : vector<16xf32>
    %266 = vector.multi_reduction <maximumf>, %265, %cst_102 [1] : vector<16x16xf32> to vector<16xf32>
    %267 = vector.shape_cast %266 : vector<16xf32> to vector<16x1xf32>
    %268 = vector.broadcast %267 : vector<16x1xf32> to vector<16x16xf32>
    %269 = arith.subf %265, %268 : vector<16x16xf32>
    %270 = math.exp %269 : vector<16x16xf32>
    %cst_103 = arith.constant dense<0.000000e+00> : vector<16xf32>
    %271 = vector.multi_reduction <add>, %270, %cst_103 [1] : vector<16x16xf32> to vector<16xf32>
    %272 = vector.shape_cast %271 : vector<16xf32> to vector<16x1xf32>
    %273 = tpu.reciprocal %272 {approx = true} : vector<16x1xf32> -> vector<16x1xf32>
    %274 = vector.broadcast %273 : vector<16x1xf32> to vector<16x16xf32>
    %275 = arith.mulf %270, %274 : vector<16x16xf32>
    %276 = arith.truncf %275 : vector<16x16xf32> to vector<16x16xbf16>
    %277 = vector.extract_strided_slice %207 {offsets = [0, 24], sizes = [16, 8], strides = [1, 1]} : vector<16x32xbf16> to vector<16x8xbf16>
    %cst_104 = arith.constant dense<0.000000e+00> : vector<16x8xf32>
    %278 = tpu.matmul %276, %277, %cst_104 {dimension_numbers = #tpu.dot_dimension_numbers<[1], [0], [0], [1], [0, 0, 1, 1], [], []>} : vector<16x16xbf16>, vector<16x8xbf16>, vector<16x8xf32> -> vector<16x8xf32>
    %c0_105 = arith.constant 0 : index
    %c24_106 = arith.constant 24 : index
    %279 = vector.load %arg30[%c0_105, %c24_106] : memref<16x32xf32, #tpu.memory_space<vmem>>, vector<16x8xf32>
    tpu.vector_store %arg30[%c0_105, %c24_106], %278 {strides = array<i32>} : memref<16x32xf32, #tpu.memory_space<vmem>>, vector<16x8xf32>,
    %c0_107 = arith.constant 0 : index
    %c0_108 = arith.constant 0 : index
    %280 = vector.load %arg30[%c0_107, %c0_108] : memref<16x32xf32, #tpu.memory_space<vmem>>, vector<16x32xf32>
    %281 = arith.truncf %280 : vector<16x32xf32> to vector<16x32xbf16>
    %c0_109 = arith.constant 0 : index
    %c0_110 = arith.constant 0 : index
    %282 = vector.load %arg19[%c0_109, %c0_110] : memref<32x32xbf16, #tpu.memory_space<vmem>>, vector<32x32xbf16>
    %cst_111 = arith.constant dense<0.000000e+00> : vector<16x32xf32>
    %283 = tpu.matmul %281, %282, %cst_111 {dimension_numbers = #tpu.dot_dimension_numbers<[1], [0], [0], [1], [0, 0, 1, 1], [], []>} : vector<16x32xbf16>, vector<32x32xbf16>, vector<16x32xf32> -> vector<16x32xf32>
    %c0_112 = arith.constant 0 : index
    %c0_113 = arith.constant 0 : index
    %284 = vector.load %arg20[%c0_112, %c0_113] : memref<1x32xf32, #tpu.memory_space<vmem>>, vector<1x32xf32>
    %285 = vector.broadcast %284 : vector<1x32xf32> to vector<16x32xf32>
    %286 = arith.addf %283, %285 : vector<16x32xf32>
    %287 = arith.addf %193, %286 : vector<16x32xf32>
    %c0_114 = arith.constant 0 : index
    %c0_115 = arith.constant 0 : index
    %288 = vector.load %arg21[%c0_114, %c0_115] : memref<1x32xf32, #tpu.memory_space<vmem>>, vector<1x32xf32>
    %c0_116 = arith.constant 0 : index
    %c0_117 = arith.constant 0 : index
    %289 = vector.load %arg22[%c0_116, %c0_117] : memref<1x32xf32, #tpu.memory_space<vmem>>, vector<1x32xf32>
    %cst_118 = arith.constant dense<0.000000e+00> : vector<16xf32>
    %290 = vector.multi_reduction <add>, %287, %cst_118 [1] : vector<16x32xf32> to vector<16xf32>
    %291 = vector.shape_cast %290 : vector<16xf32> to vector<16x1xf32>
    %cst_119 = arith.constant 3.200000e+01 : f32
    %292 = vector.broadcast %cst_119 : f32 to vector<16x1xf32>
    %293 = arith.divf %291, %292 : vector<16x1xf32>
    %294 = vector.broadcast %293 : vector<16x1xf32> to vector<16x32xf32>
    %295 = arith.subf %287, %294 : vector<16x32xf32>
    %296 = arith.mulf %295, %295 : vector<16x32xf32>
    %cst_120 = arith.constant dense<0.000000e+00> : vector<16xf32>
    %297 = vector.multi_reduction <add>, %296, %cst_120 [1] : vector<16x32xf32> to vector<16xf32>
    %298 = vector.shape_cast %297 : vector<16xf32> to vector<16x1xf32>
    %cst_121 = arith.constant 3.200000e+01 : f32
    %299 = vector.broadcast %cst_121 : f32 to vector<16x1xf32>
    %300 = arith.divf %298, %299 : vector<16x1xf32>
    %301 = vector.broadcast %293 : vector<16x1xf32> to vector<16x32xf32>
    %302 = arith.subf %287, %301 : vector<16x32xf32>
    %cst_122 = arith.constant 1.000000e-07 : f32
    %303 = vector.broadcast %cst_122 : f32 to vector<16x1xf32>
    %304 = arith.addf %300, %303 : vector<16x1xf32>
    %305 = math.rsqrt %304 : vector<16x1xf32>
    %306 = vector.broadcast %305 : vector<16x1xf32> to vector<16x32xf32>
    %307 = arith.mulf %302, %306 : vector<16x32xf32>
    %308 = vector.broadcast %288 : vector<1x32xf32> to vector<16x32xf32>
    %309 = arith.mulf %307, %308 : vector<16x32xf32>
    %310 = vector.broadcast %289 : vector<1x32xf32> to vector<16x32xf32>
    %311 = arith.addf %309, %310 : vector<16x32xf32>
    %312 = arith.truncf %311 : vector<16x32xf32> to vector<16x32xbf16>
    %c0_123 = arith.constant 0 : index
    %c0_124 = arith.constant 0 : index
    %313 = vector.load %arg23[%c0_123, %c0_124] : memref<32x128xbf16, #tpu.memory_space<vmem>>, vector<32x128xbf16>
    %cst_125 = arith.constant dense<0.000000e+00> : vector<16x128xf32>
    %314 = tpu.matmul %312, %313, %cst_125 {dimension_numbers = #tpu.dot_dimension_numbers<[1], [0], [0], [1], [0, 0, 1, 1], [], []>} : vector<16x32xbf16>, vector<32x128xbf16>, vector<16x128xf32> -> vector<16x128xf32>
    %c0_126 = arith.constant 0 : index
    %c0_127 = arith.constant 0 : index
    %315 = vector.load %arg24[%c0_126, %c0_127] : memref<1x128xf32, #tpu.memory_space<vmem>>, vector<1x128xf32>
    %316 = vector.broadcast %315 : vector<1x128xf32> to vector<16x128xf32>
    %317 = arith.addf %314, %316 : vector<16x128xf32>
    %318 = arith.mulf %317, %317 : vector<16x128xf32>
    %319 = arith.mulf %317, %318 : vector<16x128xf32>
    %cst_128 = arith.constant 4.471500e-02 : f32
    %320 = vector.broadcast %cst_128 : f32 to vector<16x128xf32>
    %321 = arith.mulf %320, %319 : vector<16x128xf32>
    %322 = arith.addf %317, %321 : vector<16x128xf32>
    %cst_129 = arith.constant 0.797884583 : f32
    %323 = vector.broadcast %cst_129 : f32 to vector<16x128xf32>
    %324 = arith.mulf %323, %322 : vector<16x128xf32>
    %325 = math.tanh %324 : vector<16x128xf32>
    %cst_130 = arith.constant 1.000000e+00 : f32
    %326 = vector.broadcast %cst_130 : f32 to vector<16x128xf32>
    %327 = arith.addf %326, %325 : vector<16x128xf32>
    %cst_131 = arith.constant 5.000000e-01 : f32
    %328 = vector.broadcast %cst_131 : f32 to vector<16x128xf32>
    %329 = arith.mulf %328, %327 : vector<16x128xf32>
    %330 = arith.mulf %317, %329 : vector<16x128xf32>
    %331 = arith.truncf %330 : vector<16x128xf32> to vector<16x128xbf16>
    %c0_132 = arith.constant 0 : index
    %c0_133 = arith.constant 0 : index
    %332 = vector.load %arg25[%c0_132, %c0_133] : memref<128x32xbf16, #tpu.memory_space<vmem>>, vector<128x32xbf16>
    %cst_134 = arith.constant dense<0.000000e+00> : vector<16x32xf32>
    %333 = tpu.matmul %331, %332, %cst_134 {dimension_numbers = #tpu.dot_dimension_numbers<[1], [0], [0], [1], [0, 0, 1, 1], [], []>} : vector<16x128xbf16>, vector<128x32xbf16>, vector<16x32xf32> -> vector<16x32xf32>
    %c0_135 = arith.constant 0 : index
    %c0_136 = arith.constant 0 : index
    %334 = vector.load %arg26[%c0_135, %c0_136] : memref<1x32xf32, #tpu.memory_space<vmem>>, vector<1x32xf32>
    %335 = vector.broadcast %334 : vector<1x32xf32> to vector<16x32xf32>
    %336 = arith.addf %333, %335 : vector<16x32xf32>
    %337 = arith.addf %311, %336 : vector<16x32xf32>
    %c0_137 = arith.constant 0 : index
    %c0_138 = arith.constant 0 : index
    %338 = vector.load %arg27[%c0_137, %c0_138] : memref<1x32xf32, #tpu.memory_space<vmem>>, vector<1x32xf32>
    %c0_139 = arith.constant 0 : index
    %c0_140 = arith.constant 0 : index
    %339 = vector.load %arg28[%c0_139, %c0_140] : memref<1x32xf32, #tpu.memory_space<vmem>>, vector<1x32xf32>
    %cst_141 = arith.constant dense<0.000000e+00> : vector<16xf32>
    %340 = vector.multi_reduction <add>, %337, %cst_141 [1] : vector<16x32xf32> to vector<16xf32>
    %341 = vector.shape_cast %340 : vector<16xf32> to vector<16x1xf32>
    %cst_142 = arith.constant 3.200000e+01 : f32
    %342 = vector.broadcast %cst_142 : f32 to vector<16x1xf32>
    %343 = arith.divf %341, %342 : vector<16x1xf32>
    %344 = vector.broadcast %343 : vector<16x1xf32> to vector<16x32xf32>
    %345 = arith.subf %337, %344 : vector<16x32xf32>
    %346 = arith.mulf %345, %345 : vector<16x32xf32>
    %cst_143 = arith.constant dense<0.000000e+00> : vector<16xf32>
    %347 = vector.multi_reduction <add>, %346, %cst_143 [1] : vector<16x32xf32> to vector<16xf32>
    %348 = vector.shape_cast %347 : vector<16xf32> to vector<16x1xf32>
    %cst_144 = arith.constant 3.200000e+01 : f32
    %349 = vector.broadcast %cst_144 : f32 to vector<16x1xf32>
    %350 = arith.divf %348, %349 : vector<16x1xf32>
    %351 = vector.broadcast %343 : vector<16x1xf32> to vector<16x32xf32>
    %352 = arith.subf %337, %351 : vector<16x32xf32>
    %cst_145 = arith.constant 1.000000e-07 : f32
    %353 = vector.broadcast %cst_145 : f32 to vector<16x1xf32>
    %354 = arith.addf %350, %353 : vector<16x1xf32>
    %355 = math.rsqrt %354 : vector<16x1xf32>
    %356 = vector.broadcast %355 : vector<16x1xf32> to vector<16x32xf32>
    %357 = arith.mulf %352, %356 : vector<16x32xf32>
    %358 = vector.broadcast %338 : vector<1x32xf32> to vector<16x32xf32>
    %359 = arith.mulf %357, %358 : vector<16x32xf32>
    %360 = vector.broadcast %339 : vector<1x32xf32> to vector<16x32xf32>
    %361 = arith.addf %359, %360 : vector<16x32xf32>
    %c0_146 = arith.constant 0 : index
    %c0_147 = arith.constant 0 : index
    %362 = vector.load %arg29[%c0_146, %c0_147] : memref<16x32xf32, #tpu.memory_space<vmem>>, vector<16x32xf32>
    tpu.vector_store %arg29[%c0_146, %c0_147], %361 {strides = array<i32>} : memref<16x32xf32, #tpu.memory_space<vmem>>, vector<16x32xf32>,
    return
  }
  func.func @transform_0(%arg0: i32) -> (i32, i32) {
    %c0_i32 = arith.constant 0 : i32
    %c0_i32_0 = arith.constant 0 : i32
    %c0_i32_1 = arith.constant 0 : i32
    return %c0_i32, %c0_i32_0 : i32, i32
  }
  func.func @transform_1(%arg0: i32) -> (i32, i32) {
    %c0_i32 = arith.constant 0 : i32
    %c0_i32_0 = arith.constant 0 : i32
    %c0_i32_1 = arith.constant 0 : i32
    return %c0_i32, %c0_i32_0 : i32, i32
  }
  func.func @transform_2(%arg0: i32) -> (i32, i32) {
    %c0_i32 = arith.constant 0 : i32
    %c0_i32_0 = arith.constant 0 : i32
    %c0_i32_1 = arith.constant 0 : i32
    return %c0_i32, %c0_i32_0 : i32, i32
  }
  func.func @transform_3(%arg0: i32) -> (i32, i32) {
    %c0_i32 = arith.constant 0 : i32
    %c0_i32_0 = arith.constant 0 : i32
    %c0_i32_1 = arith.constant 0 : i32
    return %c0_i32, %c0_i32_0 : i32, i32
  }
  func.func @transform_4(%arg0: i32) -> (i32, i32) {
    %c0_i32 = arith.constant 0 : i32
    %c0_i32_0 = arith.constant 0 : i32
    %c0_i32_1 = arith.constant 0 : i32
    return %c0_i32, %c0_i32_0 : i32, i32
  }
  func.func @transform_5(%arg0: i32) -> (i32, i32) {
    %c0_i32 = arith.constant 0 : i32
    %c0_i32_0 = arith.constant 0 : i32
    %c0_i32_1 = arith.constant 0 : i32
    return %c0_i32, %c0_i32_0 : i32, i32
  }
  func.func @transform_6(%arg0: i32) -> (i32, i32) {
    %c0_i32 = arith.constant 0 : i32
    %c0_i32_0 = arith.constant 0 : i32
    %c0_i32_1 = arith.constant 0 : i32
    return %c0_i32, %c0_i32_0 : i32, i32
  }
  func.func @transform_7(%arg0: i32) -> (i32, i32) {
    %c0_i32 = arith.constant 0 : i32
    %c0_i32_0 = arith.constant 0 : i32
    %c0_i32_1 = arith.constant 0 : i32
    return %c0_i32, %c0_i32_0 : i32, i32
  }
  func.func @transform_8(%arg0: i32) -> (i32, i32) {
    %c0_i32 = arith.constant 0 : i32
    %c0_i32_0 = arith.constant 0 : i32
    %c0_i32_1 = arith.constant 0 : i32
    return %c0_i32, %c0_i32_0 : i32, i32
  }
  func.func @transform_9(%arg0: i32) -> (i32, i32) {
    %c0_i32 = arith.constant 0 : i32
    %c0_i32_0 = arith.constant 0 : i32
    %c0_i32_1 = arith.constant 0 : i32
    return %c0_i32, %c0_i32_0 : i32, i32
  }
  func.func @transform_10(%arg0: i32) -> (i32, i32) {
    %c0_i32 = arith.constant 0 : i32
    %c0_i32_0 = arith.constant 0 : i32
    %c0_i32_1 = arith.constant 0 : i32
    return %c0_i32, %c0_i32_0 : i32, i32
  }
  func.func @transform_11(%arg0: i32) -> (i32, i32) {
    %c0_i32 = arith.constant 0 : i32
    %c0_i32_0 = arith.constant 0 : i32
    %c0_i32_1 = arith.constant 0 : i32
    return %c0_i32, %c0_i32_0 : i32, i32
  }
  func.func @transform_12(%arg0: i32) -> (i32, i32) {
    %c0_i32 = arith.constant 0 : i32
    %c0_i32_0 = arith.constant 0 : i32
    %c0_i32_1 = arith.constant 0 : i32
    return %c0_i32, %c0_i32_0 : i32, i32
  }
  func.func @transform_13(%arg0: i32) -> (i32, i32) {
    %c0_i32 = arith.constant 0 : i32
    %c0_i32_0 = arith.constant 0 : i32
    %c0_i32_1 = arith.constant 0 : i32
    return %c0_i32, %c0_i32_0 : i32, i32
  }
  func.func @transform_14(%arg0: i32) -> (i32, i32) {
    %c0_i32 = arith.constant 0 : i32
    %c0_i32_0 = arith.constant 0 : i32
    %c0_i32_1 = arith.constant 0 : i32
    return %c0_i32, %c0_i32_0 : i32, i32
  }
  func.func @transform_15(%arg0: i32) -> (i32, i32) {
    %c0_i32 = arith.constant 0 : i32
    %c0_i32_0 = arith.constant 0 : i32
    %c0_i32_1 = arith.constant 0 : i32
    return %c0_i32, %c0_i32_0 : i32, i32
  }
  func.func @transform_16(%arg0: i32) -> (i32, i32) {
    %c0_i32 = arith.constant 0 : i32
    %c0_i32_0 = arith.constant 0 : i32
    %c0_i32_1 = arith.constant 0 : i32
    return %c0_i32, %c0_i32_0 : i32, i32
  }
  func.func @transform_17(%arg0: i32) -> (i32, i32) {
    %c0_i32 = arith.constant 0 : i32
    %c0_i32_0 = arith.constant 0 : i32
    %c0_i32_1 = arith.constant 0 : i32
    return %c0_i32, %c0_i32_0 : i32, i32
  }
  func.func @transform_18(%arg0: i32) -> (i32, i32) {
    %c0_i32 = arith.constant 0 : i32
    %c0_i32_0 = arith.constant 0 : i32
    %c0_i32_1 = arith.constant 0 : i32
    return %c0_i32, %c0_i32_0 : i32, i32
  }
  func.func @transform_19(%arg0: i32) -> (i32, i32) {
    %c0_i32 = arith.constant 0 : i32
    %c0_i32_0 = arith.constant 0 : i32
    %c0_i32_1 = arith.constant 0 : i32
    return %c0_i32, %c0_i32_0 : i32, i32
  }
  func.func @transform_20(%arg0: i32) -> (i32, i32) {
    %c0_i32 = arith.constant 0 : i32
    %c0_i32_0 = arith.constant 0 : i32
    %c0_i32_1 = arith.constant 0 : i32
    return %c0_i32, %c0_i32_0 : i32, i32
  }
  func.func @transform_21(%arg0: i32) -> (i32, i32) {
    %c0_i32 = arith.constant 0 : i32
    %c0_i32_0 = arith.constant 0 : i32
    %c0_i32_1 = arith.constant 0 : i32
    return %c0_i32, %c0_i32_0 : i32, i32
  }
  func.func @transform_22(%arg0: i32) -> (i32, i32) {
    %c0_i32 = arith.constant 0 : i32
    %c0_i32_0 = arith.constant 0 : i32
    %c0_i32_1 = arith.constant 0 : i32
    return %c0_i32, %c0_i32_0 : i32, i32
  }
  func.func @transform_23(%arg0: i32) -> (i32, i32) {
    %c0_i32 = arith.constant 0 : i32
    %c0_i32_0 = arith.constant 0 : i32
    %c0_i32_1 = arith.constant 0 : i32
    return %c0_i32, %c0_i32_0 : i32, i32
  }
  func.func @transform_24(%arg0: i32) -> (i32, i32) {
    %c0_i32 = arith.constant 0 : i32
    %c0_i32_0 = arith.constant 0 : i32
    %c0_i32_1 = arith.constant 0 : i32
    return %c0_i32, %c0_i32_0 : i32, i32
  }
  func.func @transform_25(%arg0: i32) -> (i32, i32) {
    %c0_i32 = arith.constant 0 : i32
    %c0_i32_0 = arith.constant 0 : i32
    %c0_i32_1 = arith.constant 0 : i32
    return %c0_i32, %c0_i32_0 : i32, i32
  }
  func.func @transform_26(%arg0: i32) -> (i32, i32) {
    %c0_i32 = arith.constant 0 : i32
    %c0_i32_0 = arith.constant 0 : i32
    %c0_i32_1 = arith.constant 0 : i32
    return %c0_i32, %c0_i32_0 : i32, i32
  }
  func.func @transform_27(%arg0: i32) -> (i32, i32) {
    %c0_i32 = arith.constant 0 : i32
    %c0_i32_0 = arith.constant 0 : i32
    %c0_i32_1 = arith.constant 0 : i32
    return %c0_i32, %c0_i32_0 : i32, i32
  }
  func.func @transform_28(%arg0: i32) -> (i32, i32) {
    %c0_i32 = arith.constant 0 : i32
    %c0_i32_0 = arith.constant 0 : i32
    %c0_i32_1 = arith.constant 0 : i32
    return %c0_i32, %c0_i32_0 : i32, i32
  }
}

</mosaic_0001>

<bundles_post_ra>
// kernel: deberta_encoder_forward.1
= control target key start
LH: loop header
LB: loop body
LE: loop exit
PB: predicated region body
PF: predicated region fallthrough
CT: control target
= control target key end

     0   :  { %vm94_vm0 = vcmask 261120   ;;  %v2507_v15 = vmov 0.0   ;;  %vm2508_vm1 = vmmov 0   ;;  %vm215_vm2 = vcmask 64512   ;;  %s3158_s29 = smov 40   ;;  %s3122_s0 = inlined_call_operand.vmem [shape: f32[16,32], index: 0, kind: input, shape index: {}]   ;;  %s3123_s4 = inlined_call_operand.vmem [shape: bf16[32,96], index: 4, kind: input, shape index: {}]   ;;  %s3124_s2 = inlined_call_operand.vmem [shape: f32[1,32], index: 2, kind: input, shape index: {}]   ;;  %s3125_s3 = inlined_call_operand.vmem [shape: f32[1,32], index: 3, kind: input, shape index: {}]   ;;  %s3126_s5 = inlined_call_operand.vmem [shape: f32[1,96], index: 5, kind: input, shape index: {}]   ;;  %s3127_s1 = inlined_call_operand.vmem [shape: f32[16,16], index: 1, kind: input, shape index: {}]   ;;  %s3128_s6 = inlined_call_operand.vmem [shape: bf16[32,32], index: 6, kind: input, shape index: {}]   ;;  %s3129_s7 = inlined_call_operand.vmem [shape: f32[1,32], index: 7, kind: input, shape index: {}]   ;;  %s3130_s10 = inlined_call_operand.vmem [shape: bf16[32,128], index: 10, kind: input, shape index: {}]   ;;  %s3131_s8 = inlined_call_operand.vmem [shape: f32[1,32], index: 8, kind: input, shape index: {}]   ;;  %s3132_s9 = inlined_call_operand.vmem [shape: f32[1,32], index: 9, kind: input, shape index: {}]   ;;  %s3133_s12 = inlined_call_operand.vmem [shape: bf16[128,32], index: 12, kind: input, shape index: {}]   ;;  %s3134_s11 = inlined_call_operand.vmem [shape: f32[1,128], index: 11, kind: input, shape index: {}]   ;;  %s3135_s13 = inlined_call_operand.vmem [shape: f32[1,32], index: 13, kind: input, shape index: {}]   ;;  %s3136_s16 = inlined_call_operand.vmem [shape: bf16[32,96], index: 16, kind: input, shape index: {}]   ;;  %s3137_s14 = inlined_call_operand.vmem [shape: f32[1,32], index: 14, kind: input, shape index: {}]   ;;  %s3138_s15 = inlined_call_operand.vmem [shape: f32[1,32], index: 15, kind: input, shape index: {}]   ;;  %s3139_s17 = inlined_call_operand.vmem [shape: f32[1,96], index: 17, kind: input, shape index: {}]   ;;  %s3140_s18 = inlined_call_operand.vmem [shape: bf16[32,32], index: 18, kind: input, shape index: {}]   ;;  %s3141_s19 = inlined_call_operand.vmem [shape: f32[1,32], index: 19, kind: input, shape index: {}]   ;;  %s3142_s22 = inlined_call_operand.vmem [shape: bf16[32,128], index: 22, kind: input, shape index: {}]   ;;  %s3143_s20 = inlined_call_operand.vmem [shape: f32[1,32], index: 20, kind: input, shape index: {}]   ;;  %s3144_s21 = inlined_call_operand.vmem [shape: f32[1,32], index: 21, kind: input, shape index: {}]   ;;  %s3145_s24 = inlined_call_operand.vmem [shape: bf16[128,32], index: 24, kind: input, shape index: {}]   ;;  %s3146_s23 = inlined_call_operand.vmem [shape: f32[1,128], index: 23, kind: input, shape index: {}]   ;;  %s3147_s25 = inlined_call_operand.vmem [shape: f32[1,32], index: 25, kind: input, shape index: {}]   ;;  %s3148_s26 = inlined_call_operand.vmem [shape: f32[1,32], index: 26, kind: input, shape index: {}]   ;;  %s3149_s27 = inlined_call_operand.vmem [shape: f32[1,32], index: 27, kind: input, shape index: {}]   ;;  %s3150_s28 = inlined_call_operand.vmem [shape: f32[16,32], index: 28, kind: output, shape index: {}]  }
   0x1   :  { %3168 = sst [smem:[#allocation3_spill]] %s3122_s0  ;;  %2185 = vmatprep.subr.bf16.mxu1 %v2507_v15  ;;  %2211 = vmatprep.subr.bf16.mxu0 %v2507_v15  ;;  %vm263_vm3 = vcmask 130048   ;;  %vm466_vm4 = vcmask 130112   ;;  %vm598_vm5 = vcmask 195712   ;;  %vm730_vm6 = vcmask 261312  }
   0x2   :  { %3169 = sst [smem:[#allocation4_spill]] %s3123_s4  ;;  %2189 = vmatprep.mubr.msk.bf16.mxu1 %vm2508_vm1, %v2507_v15  ;;  %2213 = vmatprep.mubr.msk.bf16.mxu0 %vm2508_vm1, %v2507_v15  ;;  %s2509_s4 = smov 96  }
   0x3   :  { %3170 = sst [smem:[#allocation5_spill]] %s3124_s2  ;;  %s3182_s0 = sld [smem:[#allocation4_spill]] }
   0x4   :  { %3171 = sst [smem:[#allocation6_spill]] %s3125_s3  ;;  %s3167_s3 = smov 104  }
   0x5   :  { %3172 = sst [smem:[#allocation7_spill]] %s3126_s5  ;;  %s2514_s5 = smov 64  }
   0x6   :  { %3173 = sst [smem:[#allocation8_spill]] %s3127_s1  ;;  %s3185_s30 = sld [smem:[#allocation7_spill]] }
   0x7   :  { %3174 = sst [smem:[#allocation9_spill]] %s3128_s6  ;;  %s3160_s6 = smov 88  }
   0x8   :  { %3175 = sst [smem:[#allocation10_spill]] %s3129_s7  ;;  %s3186_s7 = sld [smem:[#allocation8_spill]] }
   0x9   :  { %3176 = sst [smem:[#allocation11_spill]] %s3130_s10  ;;  %v2385_v14 = vld [vmem:[%s3182_s0] sm:$0xff]   ;;  %v2386_v16 = vld [vmem:[%s3182_s0 + $0x8] sm:$0xff]   ;;  %s3184_s10 = sld [smem:[#allocation6_spill]] }
   0xa   :  { %3177 = sst [smem:[#allocation12_spill]] %s3131_s8  ;;  %s3181_s8 = sld [smem:[#allocation3_spill]]  ;;  %2186 = vmatpush3.bf16.msra.mxu1 %v2385_v14 }
   0xb   :  { %3178 = sst [smem:[#allocation13_spill]] %s3132_s9  ;;  %2187 = vmatprep.subr.bf16.mxu1 %v2507_v15  ;;  %s2511_s9 = smov 120  }
   0xc   :  { %3179 = sst [smem:[#allocation14_spill]] %s3133_s12  ;;  %v2051_v34 = vld [vmem:[%s3185_s30] ss:$0 sm:$0xff]  ;;  %s2512_s0 = smov 80  }
   0xd   :  { %3180 = sst [smem:[#allocation15_spill]] %s3134_s11  ;;  %s3183_s11 = sld [smem:[#allocation5_spill]] }
   0xe   :  { %2188 = vmatpush3.bf16.msra.mxu1 %v2386_v16  ;;  %s2513_s12 = smov 72   ;;  %v2729_v47 = vld [vmem:[%s3186_s7] sm:$0xff]  ;;  %v2734_v49 = vld [vmem:[%s3186_s7 + $0x8] sm:$0xff]  ;;  %s3159_s30 = smov 56  }
   0xf   :  { %2193 = vmatprep.subr.bf16.mxu1 %v2507_v15  ;;  %v2050_v29 = vld [vmem:[%s3184_s10] ss:$0 sm:$0xff]  ;;  %s2515_s10 = smov 112   ;;  %s3161_s2 = smov 8  }
  0x10   :  { %v90_v0 = vld [vmem:[%s3181_s8] sm:$0xff]  ;;  %v91_v1 = vld [vmem:[%s3181_s8 + $0x8] sm:$0xff]  ;;  %s3157_s8 = smov 48   ;;  %s3192_s1 = sld [smem:[#allocation14_spill]] }
  0x11   :  { %v95_v2 = vsel %vm94_vm0, %v90_v0, 0.0  ;;  %v98_v3 = vsel %vm94_vm0, %v91_v1, 0.0 }
  0x12   :  { %96 = vadd.xlane.f32.xlu0 %v95_v2 }
  0x13   :  { %v2049_v25 = vld [vmem:[%s3183_s11] ss:$0 sm:$0xff]  ;;  %s3165_s11 = smov 16  }
  0x16   :  { %99 = vadd.xlane.f32.xlu0 %v98_v3 }
  0x9f   :  { %v97_v4 = vpop.xlane.xlu0 %96 }
  0xa0   :  { %v102_v5 = vmul.f32 0.03125, %v97_v4 }
  0xa2   :  { %v104_v6 = vsub.f32 %v90_v0, %v102_v5 }
  0xa3   :  { %v100_v7 = vpop.xlane.xlu0 %99 }
  0xa4   :  { %v103_v8 = vmul.f32 0.03125, %v100_v7  ;;  %v106_v9 = vmul.f32 %v104_v6, %v104_v6 }
  0xa6   :  { %v105_v10 = vsub.f32 %v91_v1, %v103_v8  ;;  %v108_v11 = vsel %vm94_vm0, %v106_v9, 0.0 }
  0xa7   :  { %109 = vadd.xlane.f32.xlu1 %v108_v11 }
  0xa8   :  { %v107_v12 = vmul.f32 %v105_v10, %v105_v10 }
  0xaa   :  { %v111_v13 = vsel %vm94_vm0, %v107_v12, 0.0 }
  0xab   :  { %112 = vadd.xlane.f32.xlu1 %v111_v13 }
 0x134   :  { %v110_v17 = vpop.xlane.xlu1 %109 }
 0x135   :  { %v114_v18 = vmul.f32 0.03125, %v110_v17 }
 0x137   :  { %v116_v19 = vadd.f32 1e-07, %v114_v18 }
 0x138   :  { %v113_v20 = vpop.xlane.xlu1 %112 }
 0x139   :  { %2413 = vrsqrt.f32 %v116_v19  ;;  %v115_v21 = vmul.f32 0.03125, %v113_v20 }
 0x13b   :  { %v117_v22 = vadd.f32 1e-07, %v115_v21 }
 0x13d   :  { %2415 = vrsqrt.f32 %v117_v22 }
 0x143   :  { %v2414_v23 = vpop.eup %2413 }
 0x144   :  { %v120_v24 = vmul.f32 %v2414_v23, %v104_v6 }
 0x146   :  { %v128_v28 = vmul.f32 %v2049_v25, %v120_v24 }
 0x147   :  { %v2416_v26 = vpop.eup %2415 }
 0x148   :  { %v121_v27 = vmul.f32 %v2416_v26, %v105_v10  ;;  %v2698_v31 = vadd.f32 %v2050_v29, %v128_v28 }
 0x14a   :  { %v129_v30 = vmul.f32 %v2049_v25, %v121_v27 }
 0x14c   :  { %v2700_v32 = vadd.f32 %v2050_v29, %v129_v30 }
 0x14e   :  { %v140_v33 = vpack.c.bf16 %v2700_v32, %v2698_v31 }
 0x150   :  { %2190 = vmatmul.mubr.msk.bf16.vlgmr.msra.gmra.mrb[0].mxu1 %vm94_vm0, %v140_v33 }
 0x151   :  { %2195 = vmatprep.mubr.msk.bf16.mxu1 %vm2508_vm1, %v2507_v15 }
 0x223   :  { %v201_v35 = vpop.f32.mrb[0].mxu1 }
 0x224   :  { %v202_v36 = vadd.f32 %v2051_v34, %v201_v35  ;;  %v2191_v37 = vpop.f32.mrb[1].mxu1 }
 0x225   :  { %v204_v38 = vpop.f32.mrb[2].mxu1 }
 0x226   :  { %v205_v39 = vadd.f32 %v2051_v34, %v204_v38  ;;  %v2192_v40 = vpop.f32.mrb[3].mxu1  ;;  %v208_v41 = vmul.f32 0.35355338, %v202_v36 }
 0x228   :  { %v209_v42 = vmul.f32 0.35355338, %v205_v39  ;;  %v2710_v43 = vpack.c.bf16 %v205_v39, %v202_v36 }
 0x22a   :  { %v210_v44 = vpack.c.bf16 %v209_v42, %v208_v41  ;;  %213 = vrot.lane.b32.xlu0 %v2710_v43, %s2509_s4 }
 0x22e   :  { %339 = vrot.lane.b32.xlu0 %v2710_v43, %s3160_s6  ;;  %s3189_s6 = sld [smem:[#allocation11_spill]] }
 0x232   :  { %337 = vrot.lane.b32.xlu0 %v210_v44, %s2511_s9 }
 0x236   :  { %471 = vrot.lane.b32.xlu0 %v2710_v43, %s2512_s0 }
 0x23a   :  { %603 = vrot.lane.b32.xlu0 %v2710_v43, %s2513_s12 }
 0x29c   :  { %v214_v45 = vpop.permute.xlu0 %213 }
 0x29d   :  { %v220_v46 = vsel %vm215_vm2, %v214_v45, 0 }
 0x29e   :  { %2194 = vmatpush3.bf16.xpose.msra.mxu1 %v220_v46 }
 0x29f   :  { %2199 = vmatprep.subr.bf16.mxu1 %v2507_v15 }
 0x2a0   :  { %v340_v7 = vpop.permute.xlu0 %339 }
 0x2a1   :  { %v345_v13 = vsel %vm215_vm2, %v340_v7, 0 }
 0x2a4   :  { %v338_v12 = vpop.permute.xlu0 %337 }
 0x2a5   :  { %2196 = vmatmul.mubr.msk.bf16.vlgmr.msra.gmra.mrb[4].mxu1 %vm215_vm2, %v210_v44 }
 0x2a6   :  { %2201 = vmatprep.mubr.msk.bf16.mxu1 %vm2508_vm1, %v2507_v15 }
 0x2a8   :  { %v472_v14 = vpop.permute.xlu0 %471 }
 0x2a9   :  { %v477_v16 = vsel %vm215_vm2, %v472_v14, 0 }
 0x2ac   :  { %v604_v17 = vpop.permute.xlu0 %603 }
 0x2ad   :  { %v609_v19 = vsel %vm215_vm2, %v604_v17, 0 }
 0x378   :  { %v256_v48 = vpop.f32.mrb[4].mxu1 }
 0x379   :  { %v257_v50 = vadd.f32 %v256_v48, %v2729_v47  ;;  %v2197_v51 = vpop.f32.mrb[5].mxu1 }
 0x37a   :  { %v259_v52 = vpop.f32.mrb[6].mxu1 }
 0x37b   :  { %v260_v53 = vadd.f32 %v259_v52, %v2734_v49  ;;  %v2198_v54 = vpop.f32.mrb[7].mxu1  ;;  %v264_v55 = vsel %vm263_vm3, %v257_v50, -inf }
 0x37c   :  { %265 = vmax.xlane.f32.xlu1 %v264_v55 }
 0x37d   :  { %v267_v56 = vsel %vm263_vm3, %v260_v53, -inf }
 0x380   :  { %268 = vmax.xlane.f32.xlu1 %v267_v56 }
 0x409   :  { %v266_v57 = vpop.xlane.xlu1 %265 }
 0x40a   :  { %v270_v58 = vsub.f32 %v257_v50, %v266_v57 }
 0x40c   :  { %v272_v59 = vmul.f32 1.442695, %v270_v58 }
 0x40d   :  { %v269_v60 = vpop.xlane.xlu1 %268 }
 0x40e   :  { %2417 = vpow2.f32 %v272_v59  ;;  %v271_v61 = vsub.f32 %v260_v53, %v269_v60 }
 0x410   :  { %v274_v62 = vmul.f32 1.442695, %v271_v61 }
 0x412   :  { %2419 = vpow2.f32 %v274_v62 }
 0x418   :  { %v2418_v63 = vpop.eup %2417 }
 0x419   :  { %v276_v0 = vsel %vm263_vm3, %v2418_v63, 0.0 }
 0x41a   :  { %277 = vadd.xlane.f32.xlu1 %v276_v0 }
 0x41c   :  { %v2420_v1 = vpop.eup %2419 }
 0x41d   :  { %v279_v2 = vsel %vm263_vm3, %v2420_v1, 0.0 }
 0x41e   :  { %280 = vadd.xlane.f32.xlu1 %v279_v2 }
 0x42f   :  { %287 = vrot.lane.b32.xlu1 %v2710_v43, %s2514_s5 }
 0x433   :  { %469 = vrot.lane.b32.xlu1 %v210_v44, %s2515_s10 }
 0x437   :  { %601 = vrot.lane.b32.xlu1 %v210_v44, %s3167_s3 }
 0x4a7   :  { %v278_v3 = vpop.xlane.xlu1 %277 }
 0x4a8   :  { %2421 = vrcp.f32 %v278_v3 }
 0x4ab   :  { %v281_v4 = vpop.xlane.xlu1 %280 }
 0x4ac   :  { %2423 = vrcp.f32 %v281_v4 }
 0x4af   :  { %v288_v5 = vpop.permute.xlu1 %287 }
 0x4b0   :  { %2200 = vmatpush3.bf16.msra.mxu1 %v288_v5 }
 0x4b1   :  { %2205 = vmatprep.subr.bf16.mxu1 %v2507_v15 }
 0x4b2   :  { %v2422_v6 = vpop.eup %2421 }
 0x4b3   :  { %v284_v9 = vmul.f32 %v2422_v6, %v2418_v63  ;;  %v470_v18 = vpop.permute.xlu1 %469 }
 0x4b6   :  { %v2424_v8 = vpop.eup %2423 }
 0x4b7   :  { %v285_v10 = vmul.f32 %v2424_v8, %v2420_v1  ;;  %v602_v20 = vpop.permute.xlu1 %601 }
 0x4b9   :  { %v286_v11 = vpack.c.bf16 %v285_v10, %v284_v9 }
 0x4bb   :  { %2202 = vmatmul.mubr.msk.bf16.vlgmr.msra.gmra.mrb[8].mxu1 %vm263_vm3, %v286_v11 }
 0x4bc   :  { %2206 = vmatpush3.bf16.xpose.msra.mxu1 %v345_v13  ;;  %2207 = vmatprep.mubr.msk.bf16.mxu1 %vm2508_vm1, %v2507_v15 }
 0x4bd   :  { %2217 = vmatprep.subr.bf16.mxu1 %v2507_v15 }
 0x4c3   :  { %2208 = vmatmul.mubr.msk.bf16.vlgmr.msra.gmra.mrb[12].mxu1 %vm215_vm2, %v338_v12 }
 0x4c4   :  { %2218 = vmatpush3.bf16.xpose.msra.mxu1 %v477_v16  ;;  %2219 = vmatprep.mubr.msk.bf16.mxu1 %vm2508_vm1, %v2507_v15 }
 0x4c5   :  { %2229 = vmatprep.subr.bf16.mxu1 %v2507_v15 }
 0x4cb   :  { %2220 = vmatmul.mubr.msk.bf16.vlgmr.msra.gmra.mrb[16].mxu1 %vm215_vm2, %v470_v18 }
 0x4cc   :  { %2230 = vmatpush3.bf16.xpose.msra.mxu1 %v609_v19  ;;  %2231 = vmatprep.mubr.msk.bf16.mxu1 %vm2508_vm1, %v2507_v15 }
 0x4cd   :  { %2241 = vmatprep.subr.bf16.mxu1 %v2507_v15 }
 0x4d3   :  { %2232 = vmatmul.mubr.msk.bf16.vlgmr.msra.gmra.mrb[20].mxu1 %vm215_vm2, %v602_v20 }
 0x4d4   :  { %2245 = vmatprep.mubr.msk.bf16.mxu1 %vm2508_vm1, %v2507_v15 }
 0x58e   :  { %v327_v21 = vpop.f32.mrb[8].mxu1 }
 0x58f   :  { %334 = vst.msk [vmem:[#allocation2] sm:$0xff] %vm215_vm2, %v327_v21  ;;  %v2203_v22 = vpop.f32.mrb[9].mxu1 }
 0x590   :  { %v330_v23 = vpop.f32.mrb[10].mxu1 }
 0x591   :  { %335 = vst.msk [vmem:[#allocation2 + $0x8] sm:$0xff] %vm215_vm2, %v330_v23  ;;  %v2204_v24 = vpop.f32.mrb[11].mxu1 }
 0x596   :  { %v381_v25 = vpop.f32.mrb[12].mxu1 }
 0x597   :  { %v382_v26 = vadd.f32 %v381_v25, %v2729_v47  ;;  %v2209_v27 = vpop.f32.mrb[13].mxu1 }
 0x598   :  { %v384_v28 = vpop.f32.mrb[14].mxu1 }
 0x599   :  { %v385_v29 = vadd.f32 %v384_v28, %v2734_v49  ;;  %v2210_v30 = vpop.f32.mrb[15].mxu1  ;;  %v388_v33 = vsel %vm263_vm3, %v382_v26, -inf }
 0x59a   :  { %389 = vmax.xlane.f32.xlu0 %v388_v33 }
 0x59b   :  { %v391_v34 = vsel %vm263_vm3, %v385_v29, -inf }
 0x59c   :  { %392 = vmax.xlane.f32.xlu1 %v391_v34 }
 0x59e   :  { %v513_v35 = vpop.f32.mrb[16].mxu1 }
 0x59f   :  { %v514_v36 = vadd.f32 %v513_v35, %v2729_v47  ;;  %v2221_v37 = vpop.f32.mrb[17].mxu1 }
 0x5a0   :  { %v516_v38 = vpop.f32.mrb[18].mxu1 }
 0x5a1   :  { %v517_v39 = vadd.f32 %v516_v38, %v2734_v49  ;;  %v2222_v40 = vpop.f32.mrb[19].mxu1  ;;  %v520_v41 = vsel %vm263_vm3, %v514_v36, -inf }
 0x5a2   :  { %521 = vmax.xlane.f32.xlu0 %v520_v41 }
 0x5a3   :  { %v523_v42 = vsel %vm263_vm3, %v517_v39, -inf }
 0x5a6   :  { %524 = vmax.xlane.f32.xlu0 %v523_v42  ;;  %v645_v44 = vpop.f32.mrb[20].mxu1 }
 0x5a7   :  { %v646_v45 = vadd.f32 %v645_v44, %v2729_v47  ;;  %v2233_v46 = vpop.f32.mrb[21].mxu1 }
 0x5a8   :  { %v648_v48 = vpop.f32.mrb[22].mxu1 }
 0x5a9   :  { %v649_v50 = vadd.f32 %v648_v48, %v2734_v49  ;;  %v2234_v51 = vpop.f32.mrb[23].mxu1  ;;  %v652_v52 = vsel %vm263_vm3, %v646_v45, -inf }
 0x5aa   :  { %653 = vmax.xlane.f32.xlu0 %v652_v52 }
 0x5ab   :  { %v655_v53 = vsel %vm263_vm3, %v649_v50, -inf }
 0x5ac   :  { %656 = vmax.xlane.f32.xlu1 %v655_v53 }
 0x627   :  { %v390_v54 = vpop.xlane.xlu0 %389 }
 0x628   :  { %v394_v55 = vsub.f32 %v382_v26, %v390_v54 }
 0x629   :  { %v393_v56 = vpop.xlane.xlu1 %392 }
 0x62a   :  { %v396_v57 = vmul.f32 1.442695, %v394_v55  ;;  %v395_v58 = vsub.f32 %v385_v29, %v393_v56 }
 0x62c   :  { %2425 = vpow2.f32 %v396_v57  ;;  %v398_v59 = vmul.f32 1.442695, %v395_v58 }
 0x62e   :  { %2427 = vpow2.f32 %v398_v59 }
 0x62f   :  { %v522_v60 = vpop.xlane.xlu0 %521 }
 0x630   :  { %v526_v61 = vsub.f32 %v514_v36, %v522_v60 }
 0x632   :  { %v528_v62 = vmul.f32 1.442695, %v526_v61 }
 0x633   :  { %v525_v63 = vpop.xlane.xlu0 %524 }
 0x634   :  { %2429 = vpow2.f32 %v528_v62  ;;  %v527_v0 = vsub.f32 %v517_v39, %v525_v63 }
 0x636   :  { %v2426_v1 = vpop.eup %2425  ;;  %v530_v2 = vmul.f32 1.442695, %v527_v0 }
 0x637   :  { %v654_v3 = vpop.xlane.xlu0 %653  ;;  %v400_v4 = vsel %vm263_vm3, %v2426_v1, 0.0 }
 0x638   :  { %v2428_v5 = vpop.eup %2427  ;;  %2431 = vpow2.f32 %v530_v2  ;;  %v658_v6 = vsub.f32 %v646_v45, %v654_v3  ;;  %401 = vadd.xlane.f32.xlu0 %v400_v4 }
 0x639   :  { %v403_v7 = vsel %vm263_vm3, %v2428_v5, 0.0  ;;  %v657_v16 = vpop.xlane.xlu1 %656 }
 0x63a   :  { %v660_v8 = vmul.f32 1.442695, %v658_v6  ;;  %404 = vadd.xlane.f32.xlu1 %v403_v7  ;;  %v659_v17 = vsub.f32 %v649_v50, %v657_v16 }
 0x63c   :  { %2433 = vpow2.f32 %v660_v8  ;;  %v662_v18 = vmul.f32 1.442695, %v659_v17 }
 0x63e   :  { %v2430_v9 = vpop.eup %2429  ;;  %2435 = vpow2.f32 %v662_v18 }
 0x63f   :  { %v532_v10 = vsel %vm263_vm3, %v2430_v9, 0.0 }
 0x640   :  { %533 = vadd.xlane.f32.xlu0 %v532_v10 }
 0x642   :  { %v2432_v11 = vpop.eup %2431 }
 0x643   :  { %v535_v12 = vsel %vm263_vm3, %v2432_v11, 0.0 }
 0x644   :  { %536 = vadd.xlane.f32.xlu1 %v535_v12 }
 0x646   :  { %v2434_v13 = vpop.eup %2433 }
 0x647   :  { %v664_v14 = vsel %vm263_vm3, %v2434_v13, 0.0 }
 0x648   :  { %665 = vadd.xlane.f32.xlu0 %v664_v14  ;;  %v2436_v19 = vpop.eup %2435 }
 0x649   :  { %v667_v20 = vsel %vm263_vm3, %v2436_v19, 0.0 }
 0x655   :  { %543 = vrot.lane.b32.xlu1 %v2710_v43, %s3157_s8  ;;  %s3201_s8 = smov 24  }
 0x65e   :  { %411 = vrot.lane.b32.xlu0 %v2710_v43, %s3159_s30  ;;  %s3188_s30 = sld [smem:[#allocation10_spill]] }
 0x664   :  { %v2063_v8 = vld [vmem:[%s3188_s30] ss:$0 sm:$0xff]  ;;  %s3191_s30 = sld [smem:[#allocation13_spill]] }
 0x679   :  { %668 = vadd.xlane.f32.xlu1 %v667_v20 }
 0x68a   :  { %675 = vrot.lane.b32.xlu1 %v2710_v43, %s3158_s29  ;;  %s3187_s29 = sld [smem:[#allocation9_spill]] }
 0x690   :  { %v2387_v57 = vld [vmem:[%s3187_s29] sm:$0xff]   ;;  %v2388_v58 = vld [vmem:[%s3187_s29 + $0x8] sm:$0xff]  }
 0x691   :  { %2242 = vmatpush3.bf16.msra.mxu1 %v2387_v57  ;;  %v2397_v57 = vld [vmem:[%s3192_s1 + $0x30] sm:$0xff]  }
 0x692   :  { %2243 = vmatprep.subr.bf16.mxu1 %v2507_v15 }
 0x695   :  { %2244 = vmatpush3.bf16.msra.mxu1 %v2388_v58  ;;  %v2398_v58 = vld [vmem:[%s3192_s1 + $0x38] sm:$0xff]  }
 0x696   :  { %2257 = vmatprep.subr.bf16.mxu1 %v2507_v15 }
 0x6c5   :  { %v402_v22 = vpop.xlane.xlu0 %401 }
 0x6c7   :  { %v405_v21 = vpop.xlane.xlu1 %404 }
 0x6c8   :  { %2437 = vrcp.f32 %v405_v21 }
 0x6c9   :  { %2439 = vrcp.f32 %v402_v22 }
 0x6cd   :  { %v534_v23 = vpop.xlane.xlu0 %533 }
 0x6d1   :  { %v537_v24 = vpop.xlane.xlu1 %536 }
 0x6d2   :  { %2441 = vrcp.f32 %v537_v24  ;;  %v2438_v25 = vpop.eup %2437 }
 0x6d3   :  { %2443 = vrcp.f32 %v534_v23  ;;  %v2440_v27 = vpop.eup %2439  ;;  %v409_v28 = vmul.f32 %v2438_v25, %v2428_v5 }
 0x6d4   :  { %v408_v30 = vmul.f32 %v2440_v27, %v2426_v1 }
 0x6d5   :  { %v666_v26 = vpop.xlane.xlu0 %665  ;;  %v544_v43 = vpop.permute.xlu1 %543 }
 0x6d6   :  { %v410_v33 = vpack.c.bf16 %v409_v28, %v408_v30  ;;  %2445 = vrcp.f32 %v666_v26 }
 0x6d9   :  { %v412_v29 = vpop.permute.xlu0 %411 }
 0x6da   :  { %2212 = vmatpush3.bf16.msra.mxu0 %v412_v29  ;;  %v2390_v29 = vld [vmem:[%s3189_s6 + $0x8] sm:$0xff]  }
 0x6db   :  { %2223 = vmatprep.subr.bf16.mxu0 %v2507_v15 }
 0x6dc   :  { %v2442_v34 = vpop.eup %2441 }
 0x6dd   :  { %2214 = vmatmul.mubr.msk.bf16.vlgmr.msra.gmra.mrb[0].mxu0 %vm263_vm3, %v410_v33  ;;  %v2444_v35 = vpop.eup %2443  ;;  %v541_v36 = vmul.f32 %v2442_v34, %v2432_v11 }
 0x6de   :  { %2224 = vmatpush3.bf16.msra.mxu0 %v544_v43  ;;  %2225 = vmatprep.mubr.msk.bf16.mxu0 %vm2508_vm1, %v2507_v15  ;;  %v540_v37 = vmul.f32 %v2444_v35, %v2430_v9 }
 0x6df   :  { %2235 = vmatprep.subr.bf16.mxu0 %v2507_v15 }
 0x6e0   :  { %v542_v38 = vpack.c.bf16 %v541_v36, %v540_v37  ;;  %v2446_v41 = vpop.eup %2445 }
 0x6e1   :  { %v672_v44 = vmul.f32 %v2446_v41, %v2434_v13 }
 0x6e5   :  { %2226 = vmatmul.mubr.msk.bf16.vlgmr.msra.gmra.mrb[4].mxu0 %vm263_vm3, %v542_v38 }
 0x6e6   :  { %2237 = vmatprep.mubr.msk.bf16.mxu0 %vm2508_vm1, %v2507_v15 }
 0x706   :  { %v669_v39 = vpop.xlane.xlu1 %668 }
 0x707   :  { %2447 = vrcp.f32 %v669_v39 }
 0x70a   :  { %v676_v40 = vpop.permute.xlu1 %675 }
 0x70b   :  { %2236 = vmatpush3.bf16.msra.mxu0 %v676_v40 }
 0x70c   :  { %2249 = vmatprep.subr.bf16.mxu0 %v2507_v15 }
 0x711   :  { %v2448_v42 = vpop.eup %2447 }
 0x712   :  { %v673_v45 = vmul.f32 %v2448_v42, %v2436_v19 }
 0x714   :  { %v674_v46 = vpack.c.bf16 %v673_v45, %v672_v44  ;;  %v2068_v44 = vld [vmem:[%s3191_s30] ss:$0 sm:$0xff]  ;;  %s3199_s30 = smov 8  }
 0x716   :  { %2238 = vmatmul.mubr.msk.bf16.vlgmr.msra.gmra.mrb[8].mxu0 %vm263_vm3, %v674_v46 }
 0x717   :  { %2253 = vmatprep.mubr.msk.bf16.mxu0 %vm2508_vm1, %v2507_v15 }
 0x7b0   :  { %v451_v48 = vpop.f32.mrb[0].mxu0 }
 0x7b1   :  { %460 = vrot.lane.b32.xlu1 %v451_v48, %s3161_s2  ;;  %v2215_v50 = vpop.f32.mrb[1].mxu0 }
 0x7b2   :  { %v454_v51 = vpop.f32.mrb[2].mxu0 }
 0x7b3   :  { %462 = vrot.lane.b32.xlu0 %v454_v51, %s3161_s2  ;;  %v2216_v52 = vpop.f32.mrb[3].mxu0  ;;  %s3163_s2 = smov 24   ;;  %v2391_v51 = vld [vmem:[%s3192_s1] sm:$0xff]  }
 0x7b4   :  { %v2392_v52 = vld [vmem:[%s3192_s1 + $0x8] sm:$0xff]  }
 0x7b8   :  { %v583_v53 = vpop.f32.mrb[4].mxu0 }
 0x7b9   :  { %592 = vrot.lane.b32.xlu1 %v583_v53, %s3165_s11  ;;  %v2227_v54 = vpop.f32.mrb[5].mxu0  ;;  %v2393_v53 = vld [vmem:[%s3192_s1 + $0x10] sm:$0xff]  }
 0x7ba   :  { %v586_v55 = vpop.f32.mrb[6].mxu0  ;;  %v2394_v54 = vld [vmem:[%s3192_s1 + $0x18] sm:$0xff]  }
 0x7bb   :  { %594 = vrot.lane.b32.xlu0 %v586_v55, %s3165_s11  ;;  %v2228_v56 = vpop.f32.mrb[7].mxu0  ;;  %v2395_v55 = vld [vmem:[%s3192_s1 + $0x20] sm:$0xff]   ;;  %s3193_s11 = sld [smem:[#allocation15_spill]] }
 0x7bc   :  { %v2396_v56 = vld [vmem:[%s3192_s1 + $0x28] sm:$0xff]  }
 0x7e9   :  { %v715_v59 = vpop.f32.mrb[8].mxu0 }
 0x7ea   :  { %724 = vrot.lane.b32.xlu1 %v715_v59, %s3163_s2  ;;  %v2239_v60 = vpop.f32.mrb[9].mxu0  ;;  %v2069_v59 = vld [vmem:[%s3193_s11] ss:$0 sm:$0xff] }
 0x7eb   :  { %v718_v61 = vpop.f32.mrb[10].mxu0 }
 0x7ec   :  { %726 = vrot.lane.b32.xlu0 %v718_v61, %s3163_s2  ;;  %v2240_v62 = vpop.f32.mrb[11].mxu0  ;;  %s3190_s2 = sld [smem:[#allocation12_spill]] }
 0x7f2   :  { %v2067_v39 = vld [vmem:[%s3190_s2] ss:$0 sm:$0xff]  ;;  %s3200_s2 = smov 16  }
 0x823   :  { %v461_v63 = vpop.permute.xlu1 %460 }
 0x824   :  { %467 = vst.msk [vmem:[#allocation2] sm:$0xff] %vm466_vm4, %v461_v63 }
 0x825   :  { %v463_v0 = vpop.permute.xlu0 %462 }
 0x826   :  { %468 = vst.msk [vmem:[#allocation2 + $0x8] sm:$0xff] %vm466_vm4, %v463_v0 }
 0x82b   :  { %v593_v1 = vpop.permute.xlu1 %592 }
 0x82c   :  { %599 = vst.msk [vmem:[#allocation2] sm:$0xff] %vm598_vm5, %v593_v1 }
 0x82d   :  { %v595_v2 = vpop.permute.xlu0 %594 }
 0x82e   :  { %600 = vst.msk [vmem:[#allocation2 + $0x8] sm:$0xff] %vm598_vm5, %v595_v2 }
 0x85c   :  { %v725_v3 = vpop.permute.xlu1 %724 }
 0x85d   :  { %731 = vst.msk [vmem:[#allocation2] sm:$0xff] %vm730_vm6, %v725_v3 }
 0x85e   :  { %v727_v4 = vpop.permute.xlu0 %726 }
 0x85f   :  { %732 = vst.msk [vmem:[#allocation2 + $0x8] sm:$0xff] %vm730_vm6, %v727_v4 }
 0x864   :  { %v733_v5 = vld [vmem:[#allocation2] sm:$0xff] }
 0x866   :  { %v734_v6 = vld [vmem:[#allocation2 + $0x8] sm:$0xff] }
 0x867   :  { %v735_v7 = vpack.c.bf16 %v734_v6, %v733_v5 }
 0x869   :  { %2246 = vmatmul.mubr.msk.bf16.vlgmr.msra.gmra.mrb[24].mxu1 %vm94_vm0, %v735_v7 }
 0x86a   :  { %2273 = vmatprep.mubr.msk.bf16.mxu1 %vm2508_vm1, %v2507_v15  ;;  %2258 = vmatpush3.bf16.msra.mxu1 %v2391_v51 }
 0x86b   :  { %2259 = vmatprep.subr.bf16.mxu1 %v2507_v15 }
 0x86e   :  { %2260 = vmatpush3.bf16.msra.mxu1 %v2392_v52 }
 0x86f   :  { %2261 = vmatprep.subr.bf16.mxu1 %v2507_v15 }
 0x872   :  { %2262 = vmatpush3.bf16.msra.mxu1 %v2393_v53 }
 0x873   :  { %2263 = vmatprep.subr.bf16.mxu1 %v2507_v15 }
 0x876   :  { %2264 = vmatpush3.bf16.msra.mxu1 %v2394_v54  ;;  %v2082_v54 = vld [vmem:[%s3137_s14] ss:$0 sm:$0xff] }
 0x877   :  { %2265 = vmatprep.subr.bf16.mxu1 %v2507_v15 }
 0x87a   :  { %2266 = vmatpush3.bf16.msra.mxu1 %v2395_v55 }
 0x87b   :  { %2267 = vmatprep.subr.bf16.mxu1 %v2507_v15 }
 0x87e   :  { %2268 = vmatpush3.bf16.msra.mxu1 %v2396_v56 }
 0x87f   :  { %2269 = vmatprep.subr.bf16.mxu1 %v2507_v15 }
 0x882   :  { %2270 = vmatpush3.bf16.msra.mxu1 %v2397_v57 }
 0x883   :  { %2271 = vmatprep.subr.bf16.mxu1 %v2507_v15 }
 0x886   :  { %2272 = vmatpush3.bf16.msra.mxu1 %v2398_v58 }
 0x887   :  { %2303 = vmatprep.subr.bf16.mxu1 %v2507_v15 }
 0x93c   :  { %v796_v9 = vpop.f32.mrb[24].mxu1 }
 0x93d   :  { %v797_v10 = vadd.f32 %v2063_v8, %v796_v9  ;;  %v2247_v11 = vpop.f32.mrb[25].mxu1 }
 0x93e   :  { %v799_v12 = vpop.f32.mrb[26].mxu1 }
 0x93f   :  { %v800_v13 = vadd.f32 %v2063_v8, %v799_v12  ;;  %v2248_v14 = vpop.f32.mrb[27].mxu1  ;;  %v803_v16 = vadd.f32 %v797_v10, %v2698_v31 }
 0x941   :  { %v807_v17 = vsel %vm94_vm0, %v803_v16, 0.0  ;;  %v804_v18 = vadd.f32 %v800_v13, %v2700_v32  ;;  %v2389_v32 = vld [vmem:[%s3189_s6] sm:$0xff]  }
 0x942   :  { %808 = vadd.xlane.f32.xlu1 %v807_v17  ;;  %2250 = vmatpush3.bf16.msra.mxu0 %v2389_v32 }
 0x943   :  { %v810_v19 = vsel %vm94_vm0, %v804_v18, 0.0  ;;  %2251 = vmatprep.subr.bf16.mxu0 %v2507_v15 }
 0x944   :  { %811 = vadd.xlane.f32.xlu0 %v810_v19 }
 0x946   :  { %2252 = vmatpush3.bf16.msra.mxu0 %v2390_v29 }
 0x947   :  { %2277 = vmatprep.subr.bf16.mxu0 %v2507_v15 }
 0x9cf   :  { %v809_v20 = vpop.xlane.xlu1 %808 }
 0x9d0   :  { %v813_v21 = vmul.f32 0.03125, %v809_v20 }
 0x9d1   :  { %v812_v22 = vpop.xlane.xlu0 %811 }
 0x9d2   :  { %v815_v23 = vsub.f32 %v803_v16, %v813_v21  ;;  %v814_v24 = vmul.f32 0.03125, %v812_v22  ;;  %v2073_v22 = vld [vmem:[%s3135_s13] ss:$0 sm:$0xff] }
 0x9d4   :  { %v816_v25 = vsub.f32 %v804_v18, %v814_v24  ;;  %v817_v26 = vmul.f32 %v815_v23, %v815_v23 }
 0x9d6   :  { %v819_v27 = vsel %vm94_vm0, %v817_v26, 0.0  ;;  %v818_v28 = vmul.f32 %v816_v25, %v816_v25 }
 0x9d7   :  { %820 = vadd.xlane.f32.xlu0 %v819_v27 }
 0x9d8   :  { %v822_v31 = vsel %vm94_vm0, %v818_v28, 0.0 }
 0x9db   :  { %823 = vadd.xlane.f32.xlu0 %v822_v31 }
 0xa64   :  { %v821_v30 = vpop.xlane.xlu0 %820 }
 0xa65   :  { %v825_v33 = vmul.f32 0.03125, %v821_v30 }
 0xa67   :  { %v827_v34 = vadd.f32 1e-07, %v825_v33 }
 0xa68   :  { %v824_v43 = vpop.xlane.xlu0 %823 }
 0xa69   :  { %2449 = vrsqrt.f32 %v827_v34  ;;  %v826_v35 = vmul.f32 0.03125, %v824_v43 }
 0xa6b   :  { %v828_v36 = vadd.f32 1e-07, %v826_v35 }
 0xa6d   :  { %2451 = vrsqrt.f32 %v828_v36 }
 0xa73   :  { %v2450_v37 = vpop.eup %2449 }
 0xa74   :  { %v831_v38 = vmul.f32 %v2450_v37, %v815_v23 }
 0xa76   :  { %v839_v41 = vmul.f32 %v2067_v39, %v831_v38 }
 0xa77   :  { %v2452_v40 = vpop.eup %2451 }
 0xa78   :  { %v832_v42 = vmul.f32 %v2452_v40, %v816_v25  ;;  %v2849_v46 = vadd.f32 %v2068_v44, %v839_v41 }
 0xa7a   :  { %v840_v45 = vmul.f32 %v2067_v39, %v832_v42  ;;  %v2399_v42 = vld [vmem:[%s3136_s16] sm:$0xff]  }
 0xa7c   :  { %v2851_v48 = vadd.f32 %v2068_v44, %v840_v45  ;;  %v2400_v44 = vld [vmem:[%s3136_s16 + $0x8] sm:$0xff]  }
 0xa7e   :  { %v849_v50 = vpack.c.bf16 %v2851_v48, %v2849_v46 }
 0xa80   :  { %2254 = vmatmul.mubr.msk.bf16.vlgmr.msra.gmra.mrb[12].mxu0 %vm94_vm0, %v849_v50 }
 0xa81   :  { %2281 = vmatprep.mubr.msk.bf16.mxu0 %vm2508_vm1, %v2507_v15  ;;  %2278 = vmatpush3.bf16.msra.mxu0 %v2399_v42 }
 0xa82   :  { %2279 = vmatprep.subr.bf16.mxu0 %v2507_v15 }
 0xa85   :  { %2280 = vmatpush3.bf16.msra.mxu0 %v2400_v44 }
 0xa86   :  { %2285 = vmatprep.subr.bf16.mxu0 %v2507_v15 }
 0xb53   :  { %v910_v60 = vpop.f32.mrb[12].mxu0 }
 0xb54   :  { %v911_v61 = vadd.f32 %v2069_v59, %v910_v60  ;;  %v2255_v62 = vpop.f32.mrb[13].mxu0 }
 0xb55   :  { %v913_v63 = vpop.f32.mrb[14].mxu0 }
 0xb56   :  { %v917_v0 = vmul.f32 %v911_v61, %v911_v61  ;;  %v914_v1 = vadd.f32 %v2069_v59, %v913_v63  ;;  %v2256_v2 = vpop.f32.mrb[15].mxu0  ;;  %v2083_v59 = vld [vmem:[%s3138_s15] ss:$0 sm:$0xff]  ;;  %s3194_s15 = smov 104  }
 0xb58   :  { %v919_v3 = vmul.f32 %v917_v0, %v911_v61  ;;  %v918_v4 = vmul.f32 %v914_v1, %v914_v1  ;;  %v2084_v0 = vld [vmem:[%s3139_s17] ss:$0 sm:$0xff]  ;;  %s3195_s17 = smov 88  }
 0xb5a   :  { %v921_v5 = vmul.f32 0.044715, %v919_v3  ;;  %v920_v6 = vmul.f32 %v918_v4, %v914_v1 }
 0xb5c   :  { %v923_v7 = vadd.f32 %v921_v5, %v911_v61  ;;  %v922_v8 = vmul.f32 0.044715, %v920_v6 }
 0xb5e   :  { %v925_v9 = vmul.f32 0.7978846, %v923_v7  ;;  %v924_v10 = vadd.f32 %v922_v8, %v914_v1 }
 0xb60   :  { %2453 = vtanh.f32 %v925_v9  ;;  %v926_v11 = vmul.f32 0.7978846, %v924_v10 }
 0xb62   :  { %2455 = vtanh.f32 %v926_v11 }
 0xb6a   :  { %v2454_v12 = vpop.eup %2453 }
 0xb6b   :  { %v929_v13 = vadd.f32 1.0, %v2454_v12 }
 0xb6c   :  { %v2456_v14 = vpop.eup %2455 }
 0xb6d   :  { %v931_v16 = vmul.f32 0.5, %v929_v13  ;;  %v930_v17 = vadd.f32 1.0, %v2456_v14 }
 0xb6f   :  { %v932_v18 = vmul.f32 0.5, %v930_v17  ;;  %v933_v19 = vmul.f32 %v931_v16, %v911_v61 }
 0xb71   :  { %v934_v20 = vmul.f32 %v932_v18, %v914_v1 }
 0xb73   :  { %v935_v21 = vpack.c.bf16 %v934_v20, %v933_v19 }
 0xb75   :  { %2274 = vmatmul.mubr.bf16.vlgmr.msra.gmra.mrb[28].mxu1 %v935_v21 }
 0xb76   :  { %2305 = vmatprep.mubr.msk.bf16.mxu1 %vm2508_vm1, %v2507_v15 }
 0xc48   :  { %v1041_v23 = vpop.f32.mrb[28].mxu1 }
 0xc49   :  { %v1042_v24 = vadd.f32 %v2073_v22, %v1041_v23  ;;  %v2275_v25 = vpop.f32.mrb[29].mxu1 }
 0xc4a   :  { %v1044_v26 = vpop.f32.mrb[30].mxu1 }
 0xc4b   :  { %v1045_v27 = vadd.f32 %v2073_v22, %v1044_v26  ;;  %v2276_v28 = vpop.f32.mrb[31].mxu1  ;;  %v1048_v31 = vadd.f32 %v1042_v24, %v2849_v46 }
 0xc4d   :  { %v1052_v32 = vsel %vm94_vm0, %v1048_v31, 0.0  ;;  %v1049_v29 = vadd.f32 %v1045_v27, %v2851_v48 }
 0xc4e   :  { %1053 = vadd.xlane.f32.xlu1 %v1052_v32 }
 0xc4f   :  { %v1055_v30 = vsel %vm94_vm0, %v1049_v29, 0.0 }
 0xc50   :  { %1056 = vadd.xlane.f32.xlu0 %v1055_v30 }
 0xcdb   :  { %v1054_v33 = vpop.xlane.xlu1 %1053 }
 0xcdc   :  { %v1058_v34 = vmul.f32 0.03125, %v1054_v33 }
 0xcdd   :  { %v1057_v43 = vpop.xlane.xlu0 %1056 }
 0xcde   :  { %v1060_v35 = vsub.f32 %v1048_v31, %v1058_v34  ;;  %v1059_v36 = vmul.f32 0.03125, %v1057_v43 }
 0xce0   :  { %v1061_v37 = vsub.f32 %v1049_v29, %v1059_v36  ;;  %v1062_v38 = vmul.f32 %v1060_v35, %v1060_v35 }
 0xce2   :  { %v1064_v39 = vsel %vm94_vm0, %v1062_v38, 0.0  ;;  %v1063_v40 = vmul.f32 %v1061_v37, %v1061_v37 }
 0xce3   :  { %1065 = vadd.xlane.f32.xlu1 %v1064_v39 }
 0xce4   :  { %v1067_v41 = vsel %vm94_vm0, %v1063_v40, 0.0 }
 0xce5   :  { %1068 = vadd.xlane.f32.xlu0 %v1067_v41 }
 0xd70   :  { %v1066_v45 = vpop.xlane.xlu1 %1065 }
 0xd71   :  { %v1070_v46 = vmul.f32 0.03125, %v1066_v45 }
 0xd72   :  { %v1069_v48 = vpop.xlane.xlu0 %1068 }
 0xd73   :  { %v1072_v50 = vadd.f32 1e-07, %v1070_v46  ;;  %v1071_v51 = vmul.f32 0.03125, %v1069_v48 }
 0xd75   :  { %2457 = vrsqrt.f32 %v1072_v50  ;;  %v1073_v52 = vadd.f32 1e-07, %v1071_v51 }
 0xd77   :  { %2459 = vrsqrt.f32 %v1073_v52 }
 0xd7f   :  { %v2458_v53 = vpop.eup %2457 }
 0xd80   :  { %v1076_v55 = vmul.f32 %v2458_v53, %v1060_v35 }
 0xd81   :  { %v2460_v56 = vpop.eup %2459 }
 0xd82   :  { %v1084_v57 = vmul.f32 %v2082_v54, %v1076_v55  ;;  %v1077_v58 = vmul.f32 %v2460_v56, %v1061_v37 }
 0xd84   :  { %v1085_v60 = vmul.f32 %v2082_v54, %v1077_v58  ;;  %v2918_v61 = vadd.f32 %v2083_v59, %v1084_v57  ;;  %v2505_v54 = vld [vmem:[%s3186_s7] sm:$0xff]  ;;  %v2506_v58 = vld [vmem:[%s3186_s7 + $0x8] sm:$0xff]  ;;  %s3196_s7 = smov 56  }
 0xd86   :  { %v2920_v62 = vadd.f32 %v2083_v59, %v1085_v60 }
 0xd88   :  { %v1094_v63 = vpack.c.bf16 %v2920_v62, %v2918_v61 }
 0xd8a   :  { %2282 = vmatmul.mubr.msk.bf16.vlgmr.msra.gmra.mrb[16].mxu0 %vm94_vm0, %v1094_v63 }
 0xd8b   :  { %2287 = vmatprep.mubr.msk.bf16.mxu0 %vm2508_vm1, %v2507_v15 }
 0xe5d   :  { %v1155_v1 = vpop.f32.mrb[16].mxu0 }
 0xe5e   :  { %v1156_v2 = vadd.f32 %v2084_v0, %v1155_v1  ;;  %v2283_v3 = vpop.f32.mrb[17].mxu0 }
 0xe5f   :  { %v1158_v4 = vpop.f32.mrb[18].mxu0 }
 0xe60   :  { %v1159_v5 = vadd.f32 %v2084_v0, %v1158_v4  ;;  %v2284_v6 = vpop.f32.mrb[19].mxu0  ;;  %v1162_v7 = vmul.f32 0.35355338, %v1156_v2 }
 0xe62   :  { %v1163_v8 = vmul.f32 0.35355338, %v1159_v5  ;;  %v2930_v9 = vpack.c.bf16 %v1159_v5, %v1156_v2 }
 0xe64   :  { %v1164_v10 = vpack.c.bf16 %v1163_v8, %v1162_v7  ;;  %1167 = vrot.lane.b32.xlu1 %v2930_v9, %s2509_s4 }
 0xe68   :  { %1239 = vrot.lane.b32.xlu1 %v2930_v9, %s2514_s5  ;;  %s3197_s5 = smov 40  }
 0xe6c   :  { %1289 = vrot.lane.b32.xlu1 %v1164_v10, %s2511_s9 }
 0xe70   :  { %1422 = vrot.lane.b32.xlu1 %v2930_v9, %s2512_s0 }
 0xe74   :  { %1420 = vrot.lane.b32.xlu1 %v1164_v10, %s2515_s10  ;;  %s3198_s10 = smov 48  }
 0xe78   :  { %1553 = vrot.lane.b32.xlu1 %v2930_v9, %s2513_s12 }
 0xe7c   :  { %1551 = vrot.lane.b32.xlu1 %v1164_v10, %s3194_s15 }
 0xed6   :  { %v1168_v11 = vpop.permute.xlu1 %1167 }
 0xed7   :  { %v1173_v12 = vsel %vm215_vm2, %v1168_v11, 0 }
 0xed8   :  { %2286 = vmatpush3.bf16.xpose.msra.mxu0 %v1173_v12 }
 0xed9   :  { %2291 = vmatprep.subr.bf16.mxu0 %v2507_v15 }
 0xeda   :  { %v1240_v13 = vpop.permute.xlu1 %1239 }
 0xede   :  { %v1290_v43 = vpop.permute.xlu1 %1289 }
 0xedf   :  { %2288 = vmatmul.mubr.msk.bf16.vlgmr.msra.gmra.mrb[20].mxu0 %vm215_vm2, %v1164_v10 }
 0xee0   :  { %2292 = vmatpush3.bf16.msra.mxu0 %v1240_v13  ;;  %2293 = vmatprep.mubr.msk.bf16.mxu0 %vm2508_vm1, %v2507_v15 }
 0xee1   :  { %2297 = vmatprep.subr.bf16.mxu0 %v2507_v15 }
 0xee2   :  { %v1423_v40 = vpop.permute.xlu1 %1422 }
 0xee3   :  { %v1428_v42 = vsel %vm215_vm2, %v1423_v40, 0 }
 0xee6   :  { %v1421_v41 = vpop.permute.xlu1 %1420 }
 0xeea   :  { %v1554_v44 = vpop.permute.xlu1 %1553 }
 0xeeb   :  { %v1559_v45 = vsel %vm215_vm2, %v1554_v44, 0 }
 0xeee   :  { %v1552_v46 = vpop.permute.xlu1 %1551 }
 0xfb2   :  { %v1209_v14 = vpop.f32.mrb[20].mxu0 }
 0xfb3   :  { %v1210_v16 = vadd.f32 %v1209_v14, %v2729_v47  ;;  %v2289_v17 = vpop.f32.mrb[21].mxu0 }
 0xfb4   :  { %v1212_v18 = vpop.f32.mrb[22].mxu0 }
 0xfb5   :  { %v1213_v19 = vadd.f32 %v1212_v18, %v2734_v49  ;;  %v2290_v20 = vpop.f32.mrb[23].mxu0  ;;  %v1216_v21 = vsel %vm263_vm3, %v1210_v16, -inf }
 0xfb6   :  { %1217 = vmax.xlane.f32.xlu0 %v1216_v21 }
 0xfb7   :  { %v1219_v22 = vsel %vm263_vm3, %v1213_v19, -inf }
 0xfba   :  { %1220 = vmax.xlane.f32.xlu0 %v1219_v22 }
0x1043   :  { %v1218_v23 = vpop.xlane.xlu0 %1217 }
0x1044   :  { %v1222_v24 = vsub.f32 %v1210_v16, %v1218_v23 }
0x1046   :  { %v1224_v25 = vmul.f32 1.442695, %v1222_v24 }
0x1047   :  { %v1221_v26 = vpop.xlane.xlu0 %1220 }
0x1048   :  { %2461 = vpow2.f32 %v1224_v25  ;;  %v1223_v27 = vsub.f32 %v1213_v19, %v1221_v26 }
0x104a   :  { %v1226_v28 = vmul.f32 1.442695, %v1223_v27 }
0x104c   :  { %2463 = vpow2.f32 %v1226_v28 }
0x1052   :  { %v2462_v47 = vpop.eup %2461 }
0x1053   :  { %v1228_v31 = vsel %vm263_vm3, %v2462_v47, 0.0 }
0x1054   :  { %1229 = vadd.xlane.f32.xlu0 %v1228_v31 }
0x1056   :  { %v2464_v49 = vpop.eup %2463 }
0x1057   :  { %v1231_v32 = vsel %vm263_vm3, %v2464_v49, 0.0 }
0x1058   :  { %1232 = vadd.xlane.f32.xlu0 %v1231_v32 }
0x106e   :  { %1291 = vrot.lane.b32.xlu0 %v2930_v9, %s3195_s17 }
0x10e1   :  { %v1230_v29 = vpop.xlane.xlu0 %1229 }
0x10e2   :  { %2465 = vrcp.f32 %v1230_v29 }
0x10e5   :  { %v1233_v30 = vpop.xlane.xlu0 %1232 }
0x10e6   :  { %2467 = vrcp.f32 %v1233_v30 }
0x10e9   :  { %v1292_v37 = vpop.permute.xlu0 %1291 }
0x10ea   :  { %v1297_v39 = vsel %vm215_vm2, %v1292_v37, 0 }
0x10ec   :  { %v2466_v33 = vpop.eup %2465 }
0x10ed   :  { %v1236_v35 = vmul.f32 %v2466_v33, %v2462_v47 }
0x10f0   :  { %v2468_v34 = vpop.eup %2467 }
0x10f1   :  { %v1237_v36 = vmul.f32 %v2468_v34, %v2464_v49 }
0x10f3   :  { %v1238_v38 = vpack.c.bf16 %v1237_v36, %v1236_v35 }
0x10f5   :  { %2294 = vmatmul.mubr.msk.bf16.vlgmr.msra.gmra.mrb[24].mxu0 %vm263_vm3, %v1238_v38 }
0x10f6   :  { %2298 = vmatpush3.bf16.xpose.msra.mxu0 %v1297_v39  ;;  %2299 = vmatprep.mubr.msk.bf16.mxu0 %vm2508_vm1, %v2507_v15 }
0x10f7   :  { %2309 = vmatprep.subr.bf16.mxu0 %v2507_v15 }
0x10fd   :  { %2300 = vmatmul.mubr.msk.bf16.vlgmr.msra.gmra.mrb[28].mxu0 %vm215_vm2, %v1290_v43 }
0x10fe   :  { %2310 = vmatpush3.bf16.xpose.msra.mxu0 %v1428_v42  ;;  %2311 = vmatprep.mubr.msk.bf16.mxu0 %vm2508_vm1, %v2507_v15 }
0x10ff   :  { %2321 = vmatprep.subr.bf16.mxu0 %v2507_v15 }
0x1105   :  { %2312 = vmatmul.mubr.msk.bf16.vlgmr.msra.gmra.mrb[32].mxu0 %vm215_vm2, %v1421_v41 }
0x1106   :  { %2322 = vmatpush3.bf16.xpose.msra.mxu0 %v1559_v45  ;;  %2323 = vmatprep.mubr.msk.bf16.mxu0 %vm2508_vm1, %v2507_v15 }
0x1107   :  { %2333 = vmatprep.subr.bf16.mxu0 %v2507_v15 }
0x110d   :  { %2324 = vmatmul.mubr.msk.bf16.vlgmr.msra.gmra.mrb[36].mxu0 %vm215_vm2, %v1552_v46 }
0x110e   :  { %2337 = vmatprep.mubr.msk.bf16.mxu0 %vm2508_vm1, %v2507_v15 }
0x11c8   :  { %v1279_v48 = vpop.f32.mrb[24].mxu0 }
0x11c9   :  { %1286 = vst.msk [vmem:[#allocation2] sm:$0xff] %vm215_vm2, %v1279_v48  ;;  %v2295_v50 = vpop.f32.mrb[25].mxu0 }
0x11ca   :  { %v1282_v51 = vpop.f32.mrb[26].mxu0 }
0x11cb   :  { %1287 = vst.msk [vmem:[#allocation2 + $0x8] sm:$0xff] %vm215_vm2, %v1282_v51  ;;  %v2296_v52 = vpop.f32.mrb[27].mxu0 }
0x11d0   :  { %v1333_v53 = vpop.f32.mrb[28].mxu0 }
0x11d1   :  { %v1334_v55 = vadd.f32 %v2505_v54, %v1333_v53  ;;  %v2301_v56 = vpop.f32.mrb[29].mxu0 }
0x11d2   :  { %v1336_v57 = vpop.f32.mrb[30].mxu0 }
0x11d3   :  { %v1337_v59 = vadd.f32 %v2506_v58, %v1336_v57  ;;  %v2302_v60 = vpop.f32.mrb[31].mxu0  ;;  %v1340_v63 = vsel %vm263_vm3, %v1334_v55, -inf }
0x11d4   :  { %1341 = vmax.xlane.f32.xlu1 %v1340_v63 }
0x11d5   :  { %v1343_v0 = vsel %vm263_vm3, %v1337_v59, -inf }
0x11d6   :  { %1344 = vmax.xlane.f32.xlu0 %v1343_v0 }
0x11d8   :  { %v1464_v1 = vpop.f32.mrb[32].mxu0 }
0x11d9   :  { %v1465_v2 = vadd.f32 %v2505_v54, %v1464_v1  ;;  %v2313_v3 = vpop.f32.mrb[33].mxu0 }
0x11da   :  { %v1467_v4 = vpop.f32.mrb[34].mxu0 }
0x11db   :  { %v1468_v5 = vadd.f32 %v2506_v58, %v1467_v4  ;;  %v2314_v6 = vpop.f32.mrb[35].mxu0  ;;  %v1471_v7 = vsel %vm263_vm3, %v1465_v2, -inf }
0x11dc   :  { %1472 = vmax.xlane.f32.xlu0 %v1471_v7 }
0x11dd   :  { %v1474_v8 = vsel %vm263_vm3, %v1468_v5, -inf }
0x11e0   :  { %1475 = vmax.xlane.f32.xlu0 %v1474_v8  ;;  %v1595_v10 = vpop.f32.mrb[36].mxu0 }
0x11e1   :  { %v1596_v11 = vadd.f32 %v2505_v54, %v1595_v10  ;;  %v2325_v12 = vpop.f32.mrb[37].mxu0 }
0x11e2   :  { %v1598_v13 = vpop.f32.mrb[38].mxu0 }
0x11e3   :  { %v1599_v14 = vadd.f32 %v2506_v58, %v1598_v13  ;;  %v2326_v16 = vpop.f32.mrb[39].mxu0  ;;  %v1602_v17 = vsel %vm263_vm3, %v1596_v11, -inf }
0x11e4   :  { %1603 = vmax.xlane.f32.xlu1 %v1602_v17  ;;  %v2401_v16 = vld [vmem:[%s3140_s18] sm:$0xff]  }
0x11e5   :  { %v1605_v18 = vsel %vm263_vm3, %v1599_v14, -inf  ;;  %2334 = vmatpush3.bf16.msra.mxu0 %v2401_v16  ;;  %v2409_v16 = vld [vmem:[%s3145_s24 + $0x20] sm:$0xff]  }
0x11e6   :  { %1606 = vmax.xlane.f32.xlu0 %v1605_v18  ;;  %2335 = vmatprep.subr.bf16.mxu0 %v2507_v15 }
0x11f5   :  { %1363 = vrot.lane.b32.xlu1 %v2930_v9, %s3196_s7 }
0x1261   :  { %v1342_v19 = vpop.xlane.xlu1 %1341 }
0x1262   :  { %v1346_v20 = vsub.f32 %v1334_v55, %v1342_v19  ;;  %v2402_v19 = vld [vmem:[%s3140_s18 + $0x8] sm:$0xff]  }
0x1263   :  { %v1345_v21 = vpop.xlane.xlu0 %1344  ;;  %2336 = vmatpush3.bf16.msra.mxu0 %v2402_v19  ;;  %v2412_v19 = vld [vmem:[%s3145_s24 + $0x38] sm:$0xff]  }
0x1264   :  { %v1348_v22 = vmul.f32 1.442695, %v1346_v20  ;;  %v1347_v23 = vsub.f32 %v1337_v59, %v1345_v21  ;;  %2349 = vmatprep.subr.bf16.mxu0 %v2507_v15 }
0x1266   :  { %2469 = vpow2.f32 %v1348_v22  ;;  %v1350_v24 = vmul.f32 1.442695, %v1347_v23 }
0x1268   :  { %2471 = vpow2.f32 %v1350_v24 }
0x1269   :  { %v1473_v25 = vpop.xlane.xlu0 %1472 }
0x126a   :  { %v1477_v26 = vsub.f32 %v1465_v2, %v1473_v25 }
0x126c   :  { %v1479_v27 = vmul.f32 1.442695, %v1477_v26 }
0x126d   :  { %v1476_v28 = vpop.xlane.xlu0 %1475 }
0x126e   :  { %2473 = vpow2.f32 %v1479_v27  ;;  %v1478_v47 = vsub.f32 %v1468_v5, %v1476_v28 }
0x1270   :  { %v2470_v31 = vpop.eup %2469  ;;  %v1481_v49 = vmul.f32 1.442695, %v1478_v47 }
0x1271   :  { %v1604_v32 = vpop.xlane.xlu1 %1603  ;;  %v1352_v29 = vsel %vm263_vm3, %v2470_v31, 0.0 }
0x1272   :  { %v2472_v30 = vpop.eup %2471  ;;  %2475 = vpow2.f32 %v1481_v49  ;;  %v1608_v33 = vsub.f32 %v1596_v11, %v1604_v32  ;;  %1353 = vadd.xlane.f32.xlu1 %v1352_v29 }
0x1273   :  { %v1607_v34 = vpop.xlane.xlu0 %1606  ;;  %v1355_v43 = vsel %vm263_vm3, %v2472_v30, 0.0 }
0x1274   :  { %v1610_v35 = vmul.f32 1.442695, %v1608_v33  ;;  %v1609_v36 = vsub.f32 %v1599_v14, %v1607_v34  ;;  %1356 = vadd.xlane.f32.xlu0 %v1355_v43  ;;  %v2096_v33 = vld [vmem:[%s3141_s19] ss:$0 sm:$0xff] }
0x1275   :  { %v1364_v37 = vpop.permute.xlu1 %1363 }
0x1276   :  { %2477 = vpow2.f32 %v1610_v35  ;;  %v1612_v38 = vmul.f32 1.442695, %v1609_v36  ;;  %2304 = vmatpush3.bf16.msra.mxu1 %v1364_v37 }
0x1277   :  { %2315 = vmatprep.subr.bf16.mxu1 %v2507_v15 }
0x1278   :  { %v2474_v39 = vpop.eup %2473  ;;  %2479 = vpow2.f32 %v1612_v38 }
0x1279   :  { %v1483_v40 = vsel %vm263_vm3, %v2474_v39, 0.0 }
0x127a   :  { %1484 = vadd.xlane.f32.xlu1 %v1483_v40 }
0x127c   :  { %v2476_v41 = vpop.eup %2475 }
0x127d   :  { %v1486_v42 = vsel %vm263_vm3, %v2476_v41, 0.0 }
0x127e   :  { %1487 = vadd.xlane.f32.xlu0 %v1486_v42 }
0x1280   :  { %v2478_v44 = vpop.eup %2477 }
0x1281   :  { %v1614_v45 = vsel %vm263_vm3, %v2478_v44, 0.0 }
0x1282   :  { %v2480_v46 = vpop.eup %2479  ;;  %1615 = vadd.xlane.f32.xlu1 %v1614_v45 }
0x1283   :  { %v1617_v48 = vsel %vm263_vm3, %v2480_v46, 0.0 }
0x1284   :  { %1618 = vadd.xlane.f32.xlu0 %v1617_v48 }
0x1293   :  { %1625 = vrot.lane.b32.xlu1 %v2930_v9, %s3197_s5 }
0x129a   :  { %1494 = vrot.lane.b32.xlu0 %v2930_v9, %s3198_s10 }
0x12ff   :  { %v1354_v50 = vpop.xlane.xlu1 %1353 }
0x1300   :  { %2481 = vrcp.f32 %v1354_v50 }
0x1301   :  { %v1357_v51 = vpop.xlane.xlu0 %1356 }
0x1302   :  { %2483 = vrcp.f32 %v1357_v51 }
0x1307   :  { %v1485_v52 = vpop.xlane.xlu1 %1484 }
0x1308   :  { %2485 = vrcp.f32 %v1485_v52 }
0x130a   :  { %v2482_v53 = vpop.eup %2481 }
0x130b   :  { %v1488_v54 = vpop.xlane.xlu0 %1487  ;;  %v1360_v56 = vmul.f32 %v2482_v53, %v2470_v31 }
0x130c   :  { %v2484_v55 = vpop.eup %2483  ;;  %2487 = vrcp.f32 %v1488_v54 }
0x130d   :  { %v1361_v57 = vmul.f32 %v2484_v55, %v2472_v30  ;;  %v2404_v55 = vld [vmem:[%s3142_s22 + $0x8] sm:$0xff]  }
0x130f   :  { %v1616_v58 = vpop.xlane.xlu1 %1615  ;;  %v1362_v59 = vpack.c.bf16 %v1361_v57, %v1360_v56 }
0x1310   :  { %2489 = vrcp.f32 %v1616_v58 }
0x1311   :  { %2306 = vmatmul.mubr.msk.bf16.vlgmr.msra.gmra.mrb[32].mxu1 %vm263_vm3, %v1362_v59  ;;  %v1619_v60 = vpop.xlane.xlu0 %1618 }
0x1312   :  { %2491 = vrcp.f32 %v1619_v60  ;;  %2317 = vmatprep.mubr.msk.bf16.mxu1 %vm2508_vm1, %v2507_v15  ;;  %v2486_v9 = vpop.eup %2485 }
0x1313   :  { %v1491_v1 = vmul.f32 %v2486_v9, %v2474_v39  ;;  %v1626_v5 = vpop.permute.xlu1 %1625 }
0x1315   :  { %v1495_v63 = vpop.permute.xlu0 %1494 }
0x1316   :  { %v2488_v0 = vpop.eup %2487  ;;  %2316 = vmatpush3.bf16.msra.mxu1 %v1495_v63 }
0x1317   :  { %v1492_v2 = vmul.f32 %v2488_v0, %v2476_v41  ;;  %2327 = vmatprep.subr.bf16.mxu1 %v2507_v15 }
0x1319   :  { %v1493_v3 = vpack.c.bf16 %v1492_v2, %v1491_v1  ;;  %v2100_v1 = vld [vmem:[%s3143_s20] ss:$0 sm:$0xff] }
0x131a   :  { %v2490_v4 = vpop.eup %2489 }
0x131b   :  { %2318 = vmatmul.mubr.msk.bf16.vlgmr.msra.gmra.mrb[36].mxu1 %vm263_vm3, %v1493_v3  ;;  %v1622_v8 = vmul.f32 %v2490_v4, %v2478_v44 }
0x131c   :  { %v2492_v6 = vpop.eup %2491  ;;  %2328 = vmatpush3.bf16.msra.mxu1 %v1626_v5  ;;  %2329 = vmatprep.mubr.msk.bf16.mxu1 %vm2508_vm1, %v2507_v15  ;;  %v2101_v5 = vld [vmem:[%s3144_s21] ss:$0 sm:$0xff] }
0x131d   :  { %v1623_v7 = vmul.f32 %v2492_v6, %v2480_v46  ;;  %2341 = vmatprep.subr.bf16.mxu1 %v2507_v15 }
0x131f   :  { %v1624_v10 = vpack.c.bf16 %v1623_v7, %v1622_v8 }
0x1323   :  { %2330 = vmatmul.mubr.msk.bf16.vlgmr.msra.gmra.mrb[40].mxu1 %vm263_vm3, %v1624_v10 }
0x1324   :  { %2345 = vmatprep.mubr.msk.bf16.mxu1 %vm2508_vm1, %v2507_v15 }
0x13e4   :  { %v1403_v11 = vpop.f32.mrb[32].mxu1 }
0x13e5   :  { %1412 = vrot.lane.b32.xlu1 %v1403_v11, %s3199_s30  ;;  %v2307_v12 = vpop.f32.mrb[33].mxu1  ;;  %v2405_v11 = vld [vmem:[%s3145_s24] sm:$0xff]  }
0x13e6   :  { %v1406_v13 = vpop.f32.mrb[34].mxu1  ;;  %v2406_v12 = vld [vmem:[%s3145_s24 + $0x8] sm:$0xff]  }
0x13e7   :  { %v2308_v14 = vpop.f32.mrb[35].mxu1 }
0x13e8   :  { %v2408_v14 = vld [vmem:[%s3145_s24 + $0x18] sm:$0xff]  }
0x13e9   :  { %1414 = vrot.lane.b32.xlu1 %v1406_v13, %s3199_s30  ;;  %v2407_v13 = vld [vmem:[%s3145_s24 + $0x10] sm:$0xff]  }
0x13ee   :  { %v1534_v17 = vpop.f32.mrb[36].mxu1 }
0x13ef   :  { %1543 = vrot.lane.b32.xlu0 %v1534_v17, %s3200_s2  ;;  %v2319_v18 = vpop.f32.mrb[37].mxu1  ;;  %v2410_v17 = vld [vmem:[%s3145_s24 + $0x28] sm:$0xff]  }
0x13f0   :  { %v1537_v20 = vpop.f32.mrb[38].mxu1  ;;  %v2411_v18 = vld [vmem:[%s3145_s24 + $0x30] sm:$0xff]  }
0x13f1   :  { %1545 = vrot.lane.b32.xlu1 %v1537_v20, %s3200_s2  ;;  %v2320_v21 = vpop.f32.mrb[39].mxu1  ;;  %v2102_v20 = vld [vmem:[%s3146_s23] ss:$0 sm:$0xff] }
0x13f6   :  { %v1665_v22 = vpop.f32.mrb[40].mxu1 }
0x13f7   :  { %1674 = vrot.lane.b32.xlu0 %v1665_v22, %s3201_s8  ;;  %v2331_v23 = vpop.f32.mrb[41].mxu1 }
0x13f8   :  { %v1668_v24 = vpop.f32.mrb[42].mxu1 }
0x13f9   :  { %1676 = vrot.lane.b32.xlu1 %v1668_v24, %s3201_s8  ;;  %v2332_v25 = vpop.f32.mrb[43].mxu1 }
0x1457   :  { %v1413_v26 = vpop.permute.xlu1 %1412 }
0x1458   :  { %1418 = vst.msk [vmem:[#allocation2] sm:$0xff] %vm466_vm4, %v1413_v26 }
0x145b   :  { %v1415_v27 = vpop.permute.xlu1 %1414 }
0x145c   :  { %1419 = vst.msk [vmem:[#allocation2 + $0x8] sm:$0xff] %vm466_vm4, %v1415_v27 }
0x1461   :  { %v1544_v28 = vpop.permute.xlu0 %1543 }
0x1462   :  { %1549 = vst.msk [vmem:[#allocation2] sm:$0xff] %vm598_vm5, %v1544_v28 }
0x1463   :  { %v1546_v47 = vpop.permute.xlu1 %1545 }
0x1464   :  { %1550 = vst.msk [vmem:[#allocation2 + $0x8] sm:$0xff] %vm598_vm5, %v1546_v47 }
0x1469   :  { %v1675_v31 = vpop.permute.xlu0 %1674 }
0x146a   :  { %1680 = vst.msk [vmem:[#allocation2] sm:$0xff] %vm730_vm6, %v1675_v31 }
0x146b   :  { %v1677_v49 = vpop.permute.xlu1 %1676 }
0x146c   :  { %1681 = vst.msk [vmem:[#allocation2 + $0x8] sm:$0xff] %vm730_vm6, %v1677_v49 }
0x1471   :  { %v1682_v32 = vld [vmem:[#allocation2] sm:$0xff] }
0x1473   :  { %v1683_v29 = vld [vmem:[#allocation2 + $0x8] sm:$0xff] }
0x1474   :  { %v1684_v30 = vpack.c.bf16 %v1683_v29, %v1682_v32 }
0x1476   :  { %2338 = vmatmul.mubr.msk.bf16.vlgmr.msra.gmra.mrb[40].mxu0 %vm94_vm0, %v1684_v30 }
0x1477   :  { %2365 = vmatprep.mubr.msk.bf16.mxu0 %vm2508_vm1, %v2507_v15  ;;  %2350 = vmatpush3.bf16.msra.mxu0 %v2405_v11 }
0x1478   :  { %2351 = vmatprep.subr.bf16.mxu0 %v2507_v15 }
0x147b   :  { %2352 = vmatpush3.bf16.msra.mxu0 %v2406_v12  ;;  %v2116_v12 = vld [vmem:[%s3149_s27] ss:$0 sm:$0xff] }
0x147c   :  { %2353 = vmatprep.subr.bf16.mxu0 %v2507_v15 }
0x147f   :  { %2354 = vmatpush3.bf16.msra.mxu0 %v2407_v13 }
0x1480   :  { %2355 = vmatprep.subr.bf16.mxu0 %v2507_v15 }
0x1483   :  { %2356 = vmatpush3.bf16.msra.mxu0 %v2408_v14 }
0x1484   :  { %2357 = vmatprep.subr.bf16.mxu0 %v2507_v15 }
0x1487   :  { %2358 = vmatpush3.bf16.msra.mxu0 %v2409_v16 }
0x1488   :  { %2359 = vmatprep.subr.bf16.mxu0 %v2507_v15 }
0x148b   :  { %2360 = vmatpush3.bf16.msra.mxu0 %v2410_v17 }
0x148c   :  { %2361 = vmatprep.subr.bf16.mxu0 %v2507_v15 }
0x148f   :  { %2362 = vmatpush3.bf16.msra.mxu0 %v2411_v18 }
0x1490   :  { %2363 = vmatprep.subr.bf16.mxu0 %v2507_v15 }
0x1493   :  { %2364 = vmatpush3.bf16.msra.mxu0 %v2412_v19 }
0x1549   :  { %v1745_v34 = vpop.f32.mrb[40].mxu0 }
0x154a   :  { %v1746_v43 = vadd.f32 %v2096_v33, %v1745_v34  ;;  %v2339_v35 = vpop.f32.mrb[41].mxu0 }
0x154b   :  { %v1748_v36 = vpop.f32.mrb[42].mxu0 }
0x154c   :  { %v1749_v37 = vadd.f32 %v2096_v33, %v1748_v36  ;;  %v2340_v38 = vpop.f32.mrb[43].mxu0  ;;  %v1752_v39 = vadd.f32 %v1746_v43, %v2918_v61 }
0x154e   :  { %v1756_v40 = vsel %vm94_vm0, %v1752_v39, 0.0  ;;  %v1753_v41 = vadd.f32 %v1749_v37, %v2920_v62  ;;  %v2403_v62 = vld [vmem:[%s3142_s22] sm:$0xff]  }
0x154f   :  { %1757 = vadd.xlane.f32.xlu0 %v1756_v40  ;;  %2342 = vmatpush3.bf16.msra.mxu1 %v2403_v62 }
0x1550   :  { %v1759_v42 = vsel %vm94_vm0, %v1753_v41, 0.0  ;;  %2343 = vmatprep.subr.bf16.mxu1 %v2507_v15 }
0x1551   :  { %1760 = vadd.xlane.f32.xlu1 %v1759_v42  ;;  %v2106_v42 = vld [vmem:[%s3147_s25] ss:$0 sm:$0xff] }
0x1553   :  { %2344 = vmatpush3.bf16.msra.mxu1 %v2404_v55 }
0x15dc   :  { %v1758_v44 = vpop.xlane.xlu0 %1757 }
0x15dd   :  { %v1762_v45 = vmul.f32 0.03125, %v1758_v44 }
0x15de   :  { %v1761_v46 = vpop.xlane.xlu1 %1760 }
0x15df   :  { %v1764_v48 = vsub.f32 %v1752_v39, %v1762_v45  ;;  %v1763_v50 = vmul.f32 0.03125, %v1761_v46 }
0x15e1   :  { %v1765_v51 = vsub.f32 %v1753_v41, %v1763_v50  ;;  %v1766_v52 = vmul.f32 %v1764_v48, %v1764_v48 }
0x15e3   :  { %v1768_v53 = vsel %vm94_vm0, %v1766_v52, 0.0  ;;  %v1767_v54 = vmul.f32 %v1765_v51, %v1765_v51 }
0x15e4   :  { %1769 = vadd.xlane.f32.xlu0 %v1768_v53 }
0x15e5   :  { %v1771_v61 = vsel %vm94_vm0, %v1767_v54, 0.0 }
0x15e8   :  { %1772 = vadd.xlane.f32.xlu0 %v1771_v61 }
0x1671   :  { %v1770_v56 = vpop.xlane.xlu0 %1769 }
0x1672   :  { %v1774_v57 = vmul.f32 0.03125, %v1770_v56 }
0x1674   :  { %v1776_v58 = vadd.f32 1e-07, %v1774_v57 }
0x1675   :  { %v1773_v59 = vpop.xlane.xlu0 %1772 }
0x1676   :  { %2493 = vrsqrt.f32 %v1776_v58  ;;  %v1775_v60 = vmul.f32 0.03125, %v1773_v59 }
0x1678   :  { %v1777_v9 = vadd.f32 1e-07, %v1775_v60 }
0x167a   :  { %2495 = vrsqrt.f32 %v1777_v9 }
0x1680   :  { %v2494_v63 = vpop.eup %2493 }
0x1681   :  { %v1780_v0 = vmul.f32 %v2494_v63, %v1764_v48 }
0x1683   :  { %v1788_v3 = vmul.f32 %v2100_v1, %v1780_v0 }
0x1684   :  { %v2496_v2 = vpop.eup %2495 }
0x1685   :  { %v1781_v4 = vmul.f32 %v2496_v2, %v1765_v51  ;;  %v3058_v7 = vadd.f32 %v2101_v5, %v1788_v3 }
0x1687   :  { %v1789_v6 = vmul.f32 %v2100_v1, %v1781_v4 }
0x1689   :  { %v3060_v8 = vadd.f32 %v2101_v5, %v1789_v6 }
0x168b   :  { %v1798_v10 = vpack.c.bf16 %v3060_v8, %v3058_v7 }
0x168d   :  { %2346 = vmatmul.mubr.msk.bf16.vlgmr.msra.gmra.mrb[44].mxu1 %vm94_vm0, %v1798_v10 }
0x1760   :  { %v1859_v21 = vpop.f32.mrb[44].mxu1 }
0x1761   :  { %v1860_v22 = vadd.f32 %v2102_v20, %v1859_v21  ;;  %v2347_v23 = vpop.f32.mrb[45].mxu1 }
0x1762   :  { %v1862_v24 = vpop.f32.mrb[46].mxu1 }
0x1763   :  { %v1866_v25 = vmul.f32 %v1860_v22, %v1860_v22  ;;  %v1863_v26 = vadd.f32 %v2102_v20, %v1862_v24  ;;  %v2348_v27 = vpop.f32.mrb[47].mxu1 }
0x1765   :  { %v1868_v28 = vmul.f32 %v1866_v25, %v1860_v22  ;;  %v1867_v47 = vmul.f32 %v1863_v26, %v1863_v26 }
0x1767   :  { %v1870_v31 = vmul.f32 0.044715, %v1868_v28  ;;  %v1869_v15 = vmul.f32 %v1867_v47, %v1863_v26 }
0x1769   :  { %v1872_v49 = vadd.f32 %v1870_v31, %v1860_v22  ;;  %v1871_v32 = vmul.f32 0.044715, %v1869_v15 }
0x176b   :  { %v1874_v29 = vmul.f32 0.7978846, %v1872_v49  ;;  %v1873_v30 = vadd.f32 %v1871_v32, %v1863_v26 }
0x176d   :  { %2497 = vtanh.f32 %v1874_v29  ;;  %v1875_v33 = vmul.f32 0.7978846, %v1873_v30 }
0x176f   :  { %2499 = vtanh.f32 %v1875_v33 }
0x1777   :  { %v2498_v34 = vpop.eup %2497 }
0x1778   :  { %v1878_v43 = vadd.f32 1.0, %v2498_v34 }
0x1779   :  { %v2500_v35 = vpop.eup %2499 }
0x177a   :  { %v1880_v36 = vmul.f32 0.5, %v1878_v43  ;;  %v1879_v37 = vadd.f32 1.0, %v2500_v35 }
0x177c   :  { %v1881_v38 = vmul.f32 0.5, %v1879_v37  ;;  %v1882_v39 = vmul.f32 %v1880_v36, %v1860_v22 }
0x177e   :  { %v1883_v40 = vmul.f32 %v1881_v38, %v1863_v26 }
0x1780   :  { %v1884_v41 = vpack.c.bf16 %v1883_v40, %v1882_v39 }
0x1782   :  { %2366 = vmatmul.mubr.bf16.vlgmr.msra.gmra.mrb[44].mxu0 %v1884_v41 }
0x1855   :  { %v1990_v44 = vpop.f32.mrb[44].mxu0 }
0x1856   :  { %v1991_v45 = vadd.f32 %v2106_v42, %v1990_v44  ;;  %v2367_v46 = vpop.f32.mrb[45].mxu0 }
0x1857   :  { %v1993_v48 = vpop.f32.mrb[46].mxu0 }
0x1858   :  { %v1994_v50 = vadd.f32 %v2106_v42, %v1993_v48  ;;  %v2368_v51 = vpop.f32.mrb[47].mxu0  ;;  %v1997_v52 = vadd.f32 %v1991_v45, %v3058_v7 }
0x185a   :  { %v2001_v53 = vsel %vm94_vm0, %v1997_v52, 0.0  ;;  %v1998_v54 = vadd.f32 %v1994_v50, %v3060_v8  ;;  %v2115_v8 = vld [vmem:[%s3148_s26] ss:$0 sm:$0xff] }
0x185b   :  { %2002 = vadd.xlane.f32.xlu0 %v2001_v53 }
0x185c   :  { %v2004_v61 = vsel %vm94_vm0, %v1998_v54, 0.0 }
0x185d   :  { %2005 = vadd.xlane.f32.xlu1 %v2004_v61 }
0x18e8   :  { %v2003_v62 = vpop.xlane.xlu0 %2002 }
0x18e9   :  { %v2007_v55 = vmul.f32 0.03125, %v2003_v62 }
0x18ea   :  { %v2006_v56 = vpop.xlane.xlu1 %2005 }
0x18eb   :  { %v2009_v57 = vsub.f32 %v1997_v52, %v2007_v55  ;;  %v2008_v58 = vmul.f32 0.03125, %v2006_v56 }
0x18ed   :  { %v2010_v59 = vsub.f32 %v1998_v54, %v2008_v58  ;;  %v2011_v60 = vmul.f32 %v2009_v57, %v2009_v57 }
0x18ef   :  { %v2013_v9 = vsel %vm94_vm0, %v2011_v60, 0.0  ;;  %v2012_v63 = vmul.f32 %v2010_v59, %v2010_v59 }
0x18f0   :  { %2014 = vadd.xlane.f32.xlu0 %v2013_v9 }
0x18f1   :  { %v2016_v0 = vsel %vm94_vm0, %v2012_v63, 0.0 }
0x18f2   :  { %2017 = vadd.xlane.f32.xlu1 %v2016_v0 }
0x197d   :  { %v2015_v1 = vpop.xlane.xlu0 %2014 }
0x197e   :  { %v2019_v2 = vmul.f32 0.03125, %v2015_v1 }
0x197f   :  { %v2018_v3 = vpop.xlane.xlu1 %2017 }
0x1980   :  { %v2021_v4 = vadd.f32 1e-07, %v2019_v2  ;;  %v2020_v5 = vmul.f32 0.03125, %v2018_v3 }
0x1982   :  { %2501 = vrsqrt.f32 %v2021_v4  ;;  %v2022_v6 = vadd.f32 1e-07, %v2020_v5 }
0x1984   :  { %2503 = vrsqrt.f32 %v2022_v6 }
0x198c   :  { %v2502_v7 = vpop.eup %2501 }
0x198d   :  { %v2025_v10 = vmul.f32 %v2502_v7, %v2009_v57 }
0x198e   :  { %v2504_v11 = vpop.eup %2503 }
0x198f   :  { %v2033_v13 = vmul.f32 %v2115_v8, %v2025_v10  ;;  %v2026_v14 = vmul.f32 %v2504_v11, %v2010_v59 }
0x1991   :  { %v2041_v16 = vadd.f32 %v2116_v12, %v2033_v13  ;;  %v2034_v17 = vmul.f32 %v2115_v8, %v2026_v14 }
0x1993   :  { %2043 = vst.msk [vmem:[%s3150_s28] sm:$0xff] %vm94_vm0, %v2041_v16  ;;  %v2042_v18 = vadd.f32 %v2116_v12, %v2034_v17 }
0x1995   :  { %2044 = vst.msk [vmem:[%s3150_s28 + $0x8] sm:$0xff] %vm94_vm0, %v2042_v18 }

</bundles_post_ra>
